<compile_context>
chip_gen: v6e
topology: v6e:2x2x1
jax: 0.10.0
libtpu: 0.0.40
codegen_flags: <defaults>
</compile_context>

<pallas_src>
import functools

import jax
import jax.numpy as jnp
from jax.experimental import pallas as pl
from jax.experimental.pallas import tpu as pltpu

C_IN = 1
C_OUT = 10
KH = 3
KW = 3


def _round_up(a, b):
    return ((a + b - 1) // b) * b


def _cdiv(a, b):
    return (a + b - 1) // b


def _conv2d_kernel(w_ref, b_ref, x_ref, o_ref, *, img_w, hw_pad):
    # w_ref: SMEM (C_OUT*KH*KW,) f32 -- flattened OIHW weights (C_in == 1)
    # b_ref: SMEM (C_OUT,) f32
    # x_ref: VMEM (NB, hw_pad) f32   -- NB flattened images (lane-dense rows, NB % 8 == 0)
    # o_ref: VMEM (C_OUT, NB, hw_pad) f32
    x = x_ref[...]                                          # (NB, hw_pad)

    accs = [None] * C_OUT
    for kh in range(KH):
        for kw in range(KW):
            off = kh * img_w + kw
            t = kh * KW + kw
            # tap[n, p] == x[n, p + off] wherever p + off < H*W (the valid conv window);
            # wrapped / pad lanes only land outside that window and are sliced off later.
            tap = x if off == 0 else pltpu.roll(x, (hw_pad - off) % hw_pad, axis=1)
            for c in range(C_OUT):
                wv = w_ref[c * (KH * KW) + t]               # SMEM scalar, constant index
                if accs[c] is None:
                    accs[c] = b_ref[c] + wv * tap           # bias folded into first FMA
                else:
                    accs[c] = accs[c] + wv * tap

    for c in range(C_OUT):
        o_ref[c] = accs[c].astype(o_ref.dtype)              # sublane/lane-dense store


def conv_net_forward(x, weight, bias):
    """x: (N, 1, H, W); weight: (10, 1, 3, 3); bias: (10,) -> (N, 10, H-2, W-2)."""
    n, c, h, w = x.shape
    assert c == C_IN
    ho, wo = h - KH + 1, w - KW + 1
    hw = h * w
    hw_pad = _round_up(hw, 128)                             # lane-dense padded row length

    # Batch tile NB: multiple of 8 (sublane-dense), VMEM-bounded for the 64 MiB v7x part,
    # and sized so large batches get >= ~8 grid steps (DMA pipelined behind compute).
    # Double-buffered blocks per step hold (1 input + C_OUT output) rows of hw_pad f32.
    bytes_per_batch_row = 2 * (1 + C_OUT) * hw_pad * 4
    block_budget = 12 * 1024 * 1024
    nb_cap = max(8, (block_budget // bytes_per_batch_row) // 8 * 8)
    nb_target = _round_up(max(1, _cdiv(_round_up(n, 8), 8)), 8)
    nb = max(8, min(nb_cap, 512, nb_target))
    n_pad = _round_up(n, nb)
    n_tiles = n_pad // nb

    # Wrapper-side layout plumbing only (no compute hoisted out of the kernel).
    x_flat = x.reshape(n, hw).astype(jnp.float32)
    x_flat = jnp.pad(x_flat, ((0, n_pad - n), (0, hw_pad - hw)))

    w_flat = weight.reshape(C_OUT * KH * KW).astype(jnp.float32)   # SMEM scalars
    b_flat = bias.reshape(C_OUT).astype(jnp.float32)               # SMEM scalars

    kernel = functools.partial(_conv2d_kernel, img_w=w, hw_pad=hw_pad)

    out_flat = pl.pallas_call(
        kernel,
        out_shape=jax.ShapeDtypeStruct((C_OUT, n_pad, hw_pad), jnp.float32),
        grid_spec=pltpu.PrefetchScalarGridSpec(
            num_scalar_prefetch=0,
            grid=(n_tiles,),
            in_specs=[
                pl.BlockSpec(memory_space=pltpu.MemorySpace.SMEM),   # weights -> SMEM
                pl.BlockSpec(memory_space=pltpu.MemorySpace.SMEM),   # bias    -> SMEM
                pl.BlockSpec((nb, hw_pad), lambda i: (i, 0)),        # batch tile of x
            ],
            out_specs=pl.BlockSpec((C_OUT, nb, hw_pad), lambda i: (0, i, 0)),
        ),
        compiler_params=pltpu.CompilerParams(
            dimension_semantics=("parallel",),
            vmem_limit_bytes=32 * 1024 * 1024),
    )(w_flat, b_flat, x_flat)

    # (C_OUT, n_pad, hw_pad) -> (N, C_OUT, ho, wo): drop padded batch rows / pad lanes and
    # the invalid conv border (the only positions touched by roll wrap-around).
    out = out_flat[:, :n, :hw].reshape(C_OUT, n, h, w)[:, :, :ho, :wo]
    return jnp.transpose(out, (1, 0, 2, 3)).astype(x.dtype)


if __name__ == "__main__":
    key = jax.random.PRNGKey(0)
    kx, kw_, kb = jax.random.split(key, 3)

    N, H, W = 2, 16, 16
    x = jax.random.normal(kx, (N, C_IN, H, W), dtype=jnp.float32)

    # Deterministic parameter init (shapes from nn.Conv2d(1, 10, kernel_size=3)).
    fan_in = C_IN * KH * KW
    bound = 1.0 / (fan_in ** 0.5)
    weight = jax.random.uniform(kw_, (C_OUT, C_IN, KH, KW),
                                minval=-bound, maxval=bound, dtype=jnp.float32)
    bias = jax.random.uniform(kb, (C_OUT,),
                              minval=-bound, maxval=bound, dtype=jnp.float32)

    out = conv_net_forward(x, weight, bias)
    out = jax.block_until_ready(out)

    # Reference check against XLA's convolution (NCHW, OIHW, valid padding).
    ref = jax.lax.conv_general_dilated(
        x, weight, window_strides=(1, 1), padding="VALID",
        dimension_numbers=("NCHW", "OIHW", "NCHW"),
    ) + bias.reshape(1, C_OUT, 1, 1)
    assert out.shape == (N, C_OUT, H - 2, W - 2)
    assert jnp.allclose(out, ref, atol=1e-5, rtol=1e-5)

    print("KERNEL_OK")
</pallas_src>

<mosaic_0001>
module attributes {stable_mosaic.version = 11 : i64} {
  func.func @_conv2d_kernel(%arg0: i32, %arg1: memref<90xf32, #tpu.memory_space<smem>>, %arg2: memref<10xf32, #tpu.memory_space<smem>>, %arg3: memref<8x256xf32, #tpu.memory_space<vmem>>, %arg4: memref<10x8x256xf32, #tpu.memory_space<vmem>>) attributes {dimension_semantics = [#tpu.dimension_semantics<parallel>], iteration_bounds = array<i64: 1>, scalar_prefetch = 0 : i64, scratch_operands = 0 : i64, tpu.core_type = #tpu.core_type<tc>, window_params = [{transform_indices = @transform_0, window_bounds = array<i64: 90>}, {transform_indices = @transform_1, window_bounds = array<i64: 10>}, {transform_indices = @transform_2, window_bounds = array<i64: 8, 256>}, {transform_indices = @transform_3, window_bounds = array<i64: 10, 8, 256>}]} {
    %c0 = arith.constant 0 : index
    %c0_0 = arith.constant 0 : index
    %0 = vector.load %arg3[%c0, %c0_0] : memref<8x256xf32, #tpu.memory_space<vmem>>, vector<8x256xf32>
    %c0_1 = arith.constant 0 : index
    %1 = memref.load %arg1[%c0_1] : memref<90xf32, #tpu.memory_space<smem>>
    %c0_2 = arith.constant 0 : index
    %2 = memref.load %arg2[%c0_2] : memref<10xf32, #tpu.memory_space<smem>>
    %3 = vector.broadcast %1 : f32 to vector<8x256xf32>
    %4 = arith.mulf %3, %0 : vector<8x256xf32>
    %5 = vector.broadcast %2 : f32 to vector<8x256xf32>
    %6 = arith.addf %5, %4 : vector<8x256xf32>
    %c9 = arith.constant 9 : index
    %7 = memref.load %arg1[%c9] : memref<90xf32, #tpu.memory_space<smem>>
    %c1 = arith.constant 1 : index
    %8 = memref.load %arg2[%c1] : memref<10xf32, #tpu.memory_space<smem>>
    %9 = vector.broadcast %7 : f32 to vector<8x256xf32>
    %10 = arith.mulf %9, %0 : vector<8x256xf32>
    %11 = vector.broadcast %8 : f32 to vector<8x256xf32>
    %12 = arith.addf %11, %10 : vector<8x256xf32>
    %c18 = arith.constant 18 : index
    %13 = memref.load %arg1[%c18] : memref<90xf32, #tpu.memory_space<smem>>
    %c2 = arith.constant 2 : index
    %14 = memref.load %arg2[%c2] : memref<10xf32, #tpu.memory_space<smem>>
    %15 = vector.broadcast %13 : f32 to vector<8x256xf32>
    %16 = arith.mulf %15, %0 : vector<8x256xf32>
    %17 = vector.broadcast %14 : f32 to vector<8x256xf32>
    %18 = arith.addf %17, %16 : vector<8x256xf32>
    %c27 = arith.constant 27 : index
    %19 = memref.load %arg1[%c27] : memref<90xf32, #tpu.memory_space<smem>>
    %c3 = arith.constant 3 : index
    %20 = memref.load %arg2[%c3] : memref<10xf32, #tpu.memory_space<smem>>
    %21 = vector.broadcast %19 : f32 to vector<8x256xf32>
    %22 = arith.mulf %21, %0 : vector<8x256xf32>
    %23 = vector.broadcast %20 : f32 to vector<8x256xf32>
    %24 = arith.addf %23, %22 : vector<8x256xf32>
    %c36 = arith.constant 36 : index
    %25 = memref.load %arg1[%c36] : memref<90xf32, #tpu.memory_space<smem>>
    %c4 = arith.constant 4 : index
    %26 = memref.load %arg2[%c4] : memref<10xf32, #tpu.memory_space<smem>>
    %27 = vector.broadcast %25 : f32 to vector<8x256xf32>
    %28 = arith.mulf %27, %0 : vector<8x256xf32>
    %29 = vector.broadcast %26 : f32 to vector<8x256xf32>
    %30 = arith.addf %29, %28 : vector<8x256xf32>
    %c45 = arith.constant 45 : index
    %31 = memref.load %arg1[%c45] : memref<90xf32, #tpu.memory_space<smem>>
    %c5 = arith.constant 5 : index
    %32 = memref.load %arg2[%c5] : memref<10xf32, #tpu.memory_space<smem>>
    %33 = vector.broadcast %31 : f32 to vector<8x256xf32>
    %34 = arith.mulf %33, %0 : vector<8x256xf32>
    %35 = vector.broadcast %32 : f32 to vector<8x256xf32>
    %36 = arith.addf %35, %34 : vector<8x256xf32>
    %c54 = arith.constant 54 : index
    %37 = memref.load %arg1[%c54] : memref<90xf32, #tpu.memory_space<smem>>
    %c6 = arith.constant 6 : index
    %38 = memref.load %arg2[%c6] : memref<10xf32, #tpu.memory_space<smem>>
    %39 = vector.broadcast %37 : f32 to vector<8x256xf32>
    %40 = arith.mulf %39, %0 : vector<8x256xf32>
    %41 = vector.broadcast %38 : f32 to vector<8x256xf32>
    %42 = arith.addf %41, %40 : vector<8x256xf32>
    %c63 = arith.constant 63 : index
    %43 = memref.load %arg1[%c63] : memref<90xf32, #tpu.memory_space<smem>>
    %c7 = arith.constant 7 : index
    %44 = memref.load %arg2[%c7] : memref<10xf32, #tpu.memory_space<smem>>
    %45 = vector.broadcast %43 : f32 to vector<8x256xf32>
    %46 = arith.mulf %45, %0 : vector<8x256xf32>
    %47 = vector.broadcast %44 : f32 to vector<8x256xf32>
    %48 = arith.addf %47, %46 : vector<8x256xf32>
    %c72 = arith.constant 72 : index
    %49 = memref.load %arg1[%c72] : memref<90xf32, #tpu.memory_space<smem>>
    %c8 = arith.constant 8 : index
    %50 = memref.load %arg2[%c8] : memref<10xf32, #tpu.memory_space<smem>>
    %51 = vector.broadcast %49 : f32 to vector<8x256xf32>
    %52 = arith.mulf %51, %0 : vector<8x256xf32>
    %53 = vector.broadcast %50 : f32 to vector<8x256xf32>
    %54 = arith.addf %53, %52 : vector<8x256xf32>
    %c81 = arith.constant 81 : index
    %55 = memref.load %arg1[%c81] : memref<90xf32, #tpu.memory_space<smem>>
    %c9_3 = arith.constant 9 : index
    %56 = memref.load %arg2[%c9_3] : memref<10xf32, #tpu.memory_space<smem>>
    %57 = vector.broadcast %55 : f32 to vector<8x256xf32>
    %58 = arith.mulf %57, %0 : vector<8x256xf32>
    %59 = vector.broadcast %56 : f32 to vector<8x256xf32>
    %60 = arith.addf %59, %58 : vector<8x256xf32>
    %c255_i32 = arith.constant 255 : i32
    %61 = tpu.dynamic_rotate %0 by %c255_i32 dim 1 : vector<8x256xf32>, i32 -> vector<8x256xf32>
    %c1_4 = arith.constant 1 : index
    %62 = memref.load %arg1[%c1_4] : memref<90xf32, #tpu.memory_space<smem>>
    %63 = vector.broadcast %62 : f32 to vector<8x256xf32>
    %64 = arith.mulf %63, %61 : vector<8x256xf32>
    %65 = arith.addf %6, %64 : vector<8x256xf32>
    %c10 = arith.constant 10 : index
    %66 = memref.load %arg1[%c10] : memref<90xf32, #tpu.memory_space<smem>>
    %67 = vector.broadcast %66 : f32 to vector<8x256xf32>
    %68 = arith.mulf %67, %61 : vector<8x256xf32>
    %69 = arith.addf %12, %68 : vector<8x256xf32>
    %c19 = arith.constant 19 : index
    %70 = memref.load %arg1[%c19] : memref<90xf32, #tpu.memory_space<smem>>
    %71 = vector.broadcast %70 : f32 to vector<8x256xf32>
    %72 = arith.mulf %71, %61 : vector<8x256xf32>
    %73 = arith.addf %18, %72 : vector<8x256xf32>
    %c28 = arith.constant 28 : index
    %74 = memref.load %arg1[%c28] : memref<90xf32, #tpu.memory_space<smem>>
    %75 = vector.broadcast %74 : f32 to vector<8x256xf32>
    %76 = arith.mulf %75, %61 : vector<8x256xf32>
    %77 = arith.addf %24, %76 : vector<8x256xf32>
    %c37 = arith.constant 37 : index
    %78 = memref.load %arg1[%c37] : memref<90xf32, #tpu.memory_space<smem>>
    %79 = vector.broadcast %78 : f32 to vector<8x256xf32>
    %80 = arith.mulf %79, %61 : vector<8x256xf32>
    %81 = arith.addf %30, %80 : vector<8x256xf32>
    %c46 = arith.constant 46 : index
    %82 = memref.load %arg1[%c46] : memref<90xf32, #tpu.memory_space<smem>>
    %83 = vector.broadcast %82 : f32 to vector<8x256xf32>
    %84 = arith.mulf %83, %61 : vector<8x256xf32>
    %85 = arith.addf %36, %84 : vector<8x256xf32>
    %c55 = arith.constant 55 : index
    %86 = memref.load %arg1[%c55] : memref<90xf32, #tpu.memory_space<smem>>
    %87 = vector.broadcast %86 : f32 to vector<8x256xf32>
    %88 = arith.mulf %87, %61 : vector<8x256xf32>
    %89 = arith.addf %42, %88 : vector<8x256xf32>
    %c64 = arith.constant 64 : index
    %90 = memref.load %arg1[%c64] : memref<90xf32, #tpu.memory_space<smem>>
    %91 = vector.broadcast %90 : f32 to vector<8x256xf32>
    %92 = arith.mulf %91, %61 : vector<8x256xf32>
    %93 = arith.addf %48, %92 : vector<8x256xf32>
    %c73 = arith.constant 73 : index
    %94 = memref.load %arg1[%c73] : memref<90xf32, #tpu.memory_space<smem>>
    %95 = vector.broadcast %94 : f32 to vector<8x256xf32>
    %96 = arith.mulf %95, %61 : vector<8x256xf32>
    %97 = arith.addf %54, %96 : vector<8x256xf32>
    %c82 = arith.constant 82 : index
    %98 = memref.load %arg1[%c82] : memref<90xf32, #tpu.memory_space<smem>>
    %99 = vector.broadcast %98 : f32 to vector<8x256xf32>
    %100 = arith.mulf %99, %61 : vector<8x256xf32>
    %101 = arith.addf %60, %100 : vector<8x256xf32>
    %c254_i32 = arith.constant 254 : i32
    %102 = tpu.dynamic_rotate %0 by %c254_i32 dim 1 : vector<8x256xf32>, i32 -> vector<8x256xf32>
    %c2_5 = arith.constant 2 : index
    %103 = memref.load %arg1[%c2_5] : memref<90xf32, #tpu.memory_space<smem>>
    %104 = vector.broadcast %103 : f32 to vector<8x256xf32>
    %105 = arith.mulf %104, %102 : vector<8x256xf32>
    %106 = arith.addf %65, %105 : vector<8x256xf32>
    %c11 = arith.constant 11 : index
    %107 = memref.load %arg1[%c11] : memref<90xf32, #tpu.memory_space<smem>>
    %108 = vector.broadcast %107 : f32 to vector<8x256xf32>
    %109 = arith.mulf %108, %102 : vector<8x256xf32>
    %110 = arith.addf %69, %109 : vector<8x256xf32>
    %c20 = arith.constant 20 : index
    %111 = memref.load %arg1[%c20] : memref<90xf32, #tpu.memory_space<smem>>
    %112 = vector.broadcast %111 : f32 to vector<8x256xf32>
    %113 = arith.mulf %112, %102 : vector<8x256xf32>
    %114 = arith.addf %73, %113 : vector<8x256xf32>
    %c29 = arith.constant 29 : index
    %115 = memref.load %arg1[%c29] : memref<90xf32, #tpu.memory_space<smem>>
    %116 = vector.broadcast %115 : f32 to vector<8x256xf32>
    %117 = arith.mulf %116, %102 : vector<8x256xf32>
    %118 = arith.addf %77, %117 : vector<8x256xf32>
    %c38 = arith.constant 38 : index
    %119 = memref.load %arg1[%c38] : memref<90xf32, #tpu.memory_space<smem>>
    %120 = vector.broadcast %119 : f32 to vector<8x256xf32>
    %121 = arith.mulf %120, %102 : vector<8x256xf32>
    %122 = arith.addf %81, %121 : vector<8x256xf32>
    %c47 = arith.constant 47 : index
    %123 = memref.load %arg1[%c47] : memref<90xf32, #tpu.memory_space<smem>>
    %124 = vector.broadcast %123 : f32 to vector<8x256xf32>
    %125 = arith.mulf %124, %102 : vector<8x256xf32>
    %126 = arith.addf %85, %125 : vector<8x256xf32>
    %c56 = arith.constant 56 : index
    %127 = memref.load %arg1[%c56] : memref<90xf32, #tpu.memory_space<smem>>
    %128 = vector.broadcast %127 : f32 to vector<8x256xf32>
    %129 = arith.mulf %128, %102 : vector<8x256xf32>
    %130 = arith.addf %89, %129 : vector<8x256xf32>
    %c65 = arith.constant 65 : index
    %131 = memref.load %arg1[%c65] : memref<90xf32, #tpu.memory_space<smem>>
    %132 = vector.broadcast %131 : f32 to vector<8x256xf32>
    %133 = arith.mulf %132, %102 : vector<8x256xf32>
    %134 = arith.addf %93, %133 : vector<8x256xf32>
    %c74 = arith.constant 74 : index
    %135 = memref.load %arg1[%c74] : memref<90xf32, #tpu.memory_space<smem>>
    %136 = vector.broadcast %135 : f32 to vector<8x256xf32>
    %137 = arith.mulf %136, %102 : vector<8x256xf32>
    %138 = arith.addf %97, %137 : vector<8x256xf32>
    %c83 = arith.constant 83 : index
    %139 = memref.load %arg1[%c83] : memref<90xf32, #tpu.memory_space<smem>>
    %140 = vector.broadcast %139 : f32 to vector<8x256xf32>
    %141 = arith.mulf %140, %102 : vector<8x256xf32>
    %142 = arith.addf %101, %141 : vector<8x256xf32>
    %c240_i32 = arith.constant 240 : i32
    %143 = tpu.dynamic_rotate %0 by %c240_i32 dim 1 : vector<8x256xf32>, i32 -> vector<8x256xf32>
    %c3_6 = arith.constant 3 : index
    %144 = memref.load %arg1[%c3_6] : memref<90xf32, #tpu.memory_space<smem>>
    %145 = vector.broadcast %144 : f32 to vector<8x256xf32>
    %146 = arith.mulf %145, %143 : vector<8x256xf32>
    %147 = arith.addf %106, %146 : vector<8x256xf32>
    %c12 = arith.constant 12 : index
    %148 = memref.load %arg1[%c12] : memref<90xf32, #tpu.memory_space<smem>>
    %149 = vector.broadcast %148 : f32 to vector<8x256xf32>
    %150 = arith.mulf %149, %143 : vector<8x256xf32>
    %151 = arith.addf %110, %150 : vector<8x256xf32>
    %c21 = arith.constant 21 : index
    %152 = memref.load %arg1[%c21] : memref<90xf32, #tpu.memory_space<smem>>
    %153 = vector.broadcast %152 : f32 to vector<8x256xf32>
    %154 = arith.mulf %153, %143 : vector<8x256xf32>
    %155 = arith.addf %114, %154 : vector<8x256xf32>
    %c30 = arith.constant 30 : index
    %156 = memref.load %arg1[%c30] : memref<90xf32, #tpu.memory_space<smem>>
    %157 = vector.broadcast %156 : f32 to vector<8x256xf32>
    %158 = arith.mulf %157, %143 : vector<8x256xf32>
    %159 = arith.addf %118, %158 : vector<8x256xf32>
    %c39 = arith.constant 39 : index
    %160 = memref.load %arg1[%c39] : memref<90xf32, #tpu.memory_space<smem>>
    %161 = vector.broadcast %160 : f32 to vector<8x256xf32>
    %162 = arith.mulf %161, %143 : vector<8x256xf32>
    %163 = arith.addf %122, %162 : vector<8x256xf32>
    %c48 = arith.constant 48 : index
    %164 = memref.load %arg1[%c48] : memref<90xf32, #tpu.memory_space<smem>>
    %165 = vector.broadcast %164 : f32 to vector<8x256xf32>
    %166 = arith.mulf %165, %143 : vector<8x256xf32>
    %167 = arith.addf %126, %166 : vector<8x256xf32>
    %c57 = arith.constant 57 : index
    %168 = memref.load %arg1[%c57] : memref<90xf32, #tpu.memory_space<smem>>
    %169 = vector.broadcast %168 : f32 to vector<8x256xf32>
    %170 = arith.mulf %169, %143 : vector<8x256xf32>
    %171 = arith.addf %130, %170 : vector<8x256xf32>
    %c66 = arith.constant 66 : index
    %172 = memref.load %arg1[%c66] : memref<90xf32, #tpu.memory_space<smem>>
    %173 = vector.broadcast %172 : f32 to vector<8x256xf32>
    %174 = arith.mulf %173, %143 : vector<8x256xf32>
    %175 = arith.addf %134, %174 : vector<8x256xf32>
    %c75 = arith.constant 75 : index
    %176 = memref.load %arg1[%c75] : memref<90xf32, #tpu.memory_space<smem>>
    %177 = vector.broadcast %176 : f32 to vector<8x256xf32>
    %178 = arith.mulf %177, %143 : vector<8x256xf32>
    %179 = arith.addf %138, %178 : vector<8x256xf32>
    %c84 = arith.constant 84 : index
    %180 = memref.load %arg1[%c84] : memref<90xf32, #tpu.memory_space<smem>>
    %181 = vector.broadcast %180 : f32 to vector<8x256xf32>
    %182 = arith.mulf %181, %143 : vector<8x256xf32>
    %183 = arith.addf %142, %182 : vector<8x256xf32>
    %c239_i32 = arith.constant 239 : i32
    %184 = tpu.dynamic_rotate %0 by %c239_i32 dim 1 : vector<8x256xf32>, i32 -> vector<8x256xf32>
    %c4_7 = arith.constant 4 : index
    %185 = memref.load %arg1[%c4_7] : memref<90xf32, #tpu.memory_space<smem>>
    %186 = vector.broadcast %185 : f32 to vector<8x256xf32>
    %187 = arith.mulf %186, %184 : vector<8x256xf32>
    %188 = arith.addf %147, %187 : vector<8x256xf32>
    %c13 = arith.constant 13 : index
    %189 = memref.load %arg1[%c13] : memref<90xf32, #tpu.memory_space<smem>>
    %190 = vector.broadcast %189 : f32 to vector<8x256xf32>
    %191 = arith.mulf %190, %184 : vector<8x256xf32>
    %192 = arith.addf %151, %191 : vector<8x256xf32>
    %c22 = arith.constant 22 : index
    %193 = memref.load %arg1[%c22] : memref<90xf32, #tpu.memory_space<smem>>
    %194 = vector.broadcast %193 : f32 to vector<8x256xf32>
    %195 = arith.mulf %194, %184 : vector<8x256xf32>
    %196 = arith.addf %155, %195 : vector<8x256xf32>
    %c31 = arith.constant 31 : index
    %197 = memref.load %arg1[%c31] : memref<90xf32, #tpu.memory_space<smem>>
    %198 = vector.broadcast %197 : f32 to vector<8x256xf32>
    %199 = arith.mulf %198, %184 : vector<8x256xf32>
    %200 = arith.addf %159, %199 : vector<8x256xf32>
    %c40 = arith.constant 40 : index
    %201 = memref.load %arg1[%c40] : memref<90xf32, #tpu.memory_space<smem>>
    %202 = vector.broadcast %201 : f32 to vector<8x256xf32>
    %203 = arith.mulf %202, %184 : vector<8x256xf32>
    %204 = arith.addf %163, %203 : vector<8x256xf32>
    %c49 = arith.constant 49 : index
    %205 = memref.load %arg1[%c49] : memref<90xf32, #tpu.memory_space<smem>>
    %206 = vector.broadcast %205 : f32 to vector<8x256xf32>
    %207 = arith.mulf %206, %184 : vector<8x256xf32>
    %208 = arith.addf %167, %207 : vector<8x256xf32>
    %c58 = arith.constant 58 : index
    %209 = memref.load %arg1[%c58] : memref<90xf32, #tpu.memory_space<smem>>
    %210 = vector.broadcast %209 : f32 to vector<8x256xf32>
    %211 = arith.mulf %210, %184 : vector<8x256xf32>
    %212 = arith.addf %171, %211 : vector<8x256xf32>
    %c67 = arith.constant 67 : index
    %213 = memref.load %arg1[%c67] : memref<90xf32, #tpu.memory_space<smem>>
    %214 = vector.broadcast %213 : f32 to vector<8x256xf32>
    %215 = arith.mulf %214, %184 : vector<8x256xf32>
    %216 = arith.addf %175, %215 : vector<8x256xf32>
    %c76 = arith.constant 76 : index
    %217 = memref.load %arg1[%c76] : memref<90xf32, #tpu.memory_space<smem>>
    %218 = vector.broadcast %217 : f32 to vector<8x256xf32>
    %219 = arith.mulf %218, %184 : vector<8x256xf32>
    %220 = arith.addf %179, %219 : vector<8x256xf32>
    %c85 = arith.constant 85 : index
    %221 = memref.load %arg1[%c85] : memref<90xf32, #tpu.memory_space<smem>>
    %222 = vector.broadcast %221 : f32 to vector<8x256xf32>
    %223 = arith.mulf %222, %184 : vector<8x256xf32>
    %224 = arith.addf %183, %223 : vector<8x256xf32>
    %c238_i32 = arith.constant 238 : i32
    %225 = tpu.dynamic_rotate %0 by %c238_i32 dim 1 : vector<8x256xf32>, i32 -> vector<8x256xf32>
    %c5_8 = arith.constant 5 : index
    %226 = memref.load %arg1[%c5_8] : memref<90xf32, #tpu.memory_space<smem>>
    %227 = vector.broadcast %226 : f32 to vector<8x256xf32>
    %228 = arith.mulf %227, %225 : vector<8x256xf32>
    %229 = arith.addf %188, %228 : vector<8x256xf32>
    %c14 = arith.constant 14 : index
    %230 = memref.load %arg1[%c14] : memref<90xf32, #tpu.memory_space<smem>>
    %231 = vector.broadcast %230 : f32 to vector<8x256xf32>
    %232 = arith.mulf %231, %225 : vector<8x256xf32>
    %233 = arith.addf %192, %232 : vector<8x256xf32>
    %c23 = arith.constant 23 : index
    %234 = memref.load %arg1[%c23] : memref<90xf32, #tpu.memory_space<smem>>
    %235 = vector.broadcast %234 : f32 to vector<8x256xf32>
    %236 = arith.mulf %235, %225 : vector<8x256xf32>
    %237 = arith.addf %196, %236 : vector<8x256xf32>
    %c32 = arith.constant 32 : index
    %238 = memref.load %arg1[%c32] : memref<90xf32, #tpu.memory_space<smem>>
    %239 = vector.broadcast %238 : f32 to vector<8x256xf32>
    %240 = arith.mulf %239, %225 : vector<8x256xf32>
    %241 = arith.addf %200, %240 : vector<8x256xf32>
    %c41 = arith.constant 41 : index
    %242 = memref.load %arg1[%c41] : memref<90xf32, #tpu.memory_space<smem>>
    %243 = vector.broadcast %242 : f32 to vector<8x256xf32>
    %244 = arith.mulf %243, %225 : vector<8x256xf32>
    %245 = arith.addf %204, %244 : vector<8x256xf32>
    %c50 = arith.constant 50 : index
    %246 = memref.load %arg1[%c50] : memref<90xf32, #tpu.memory_space<smem>>
    %247 = vector.broadcast %246 : f32 to vector<8x256xf32>
    %248 = arith.mulf %247, %225 : vector<8x256xf32>
    %249 = arith.addf %208, %248 : vector<8x256xf32>
    %c59 = arith.constant 59 : index
    %250 = memref.load %arg1[%c59] : memref<90xf32, #tpu.memory_space<smem>>
    %251 = vector.broadcast %250 : f32 to vector<8x256xf32>
    %252 = arith.mulf %251, %225 : vector<8x256xf32>
    %253 = arith.addf %212, %252 : vector<8x256xf32>
    %c68 = arith.constant 68 : index
    %254 = memref.load %arg1[%c68] : memref<90xf32, #tpu.memory_space<smem>>
    %255 = vector.broadcast %254 : f32 to vector<8x256xf32>
    %256 = arith.mulf %255, %225 : vector<8x256xf32>
    %257 = arith.addf %216, %256 : vector<8x256xf32>
    %c77 = arith.constant 77 : index
    %258 = memref.load %arg1[%c77] : memref<90xf32, #tpu.memory_space<smem>>
    %259 = vector.broadcast %258 : f32 to vector<8x256xf32>
    %260 = arith.mulf %259, %225 : vector<8x256xf32>
    %261 = arith.addf %220, %260 : vector<8x256xf32>
    %c86 = arith.constant 86 : index
    %262 = memref.load %arg1[%c86] : memref<90xf32, #tpu.memory_space<smem>>
    %263 = vector.broadcast %262 : f32 to vector<8x256xf32>
    %264 = arith.mulf %263, %225 : vector<8x256xf32>
    %265 = arith.addf %224, %264 : vector<8x256xf32>
    %c224_i32 = arith.constant 224 : i32
    %266 = tpu.dynamic_rotate %0 by %c224_i32 dim 1 : vector<8x256xf32>, i32 -> vector<8x256xf32>
    %c6_9 = arith.constant 6 : index
    %267 = memref.load %arg1[%c6_9] : memref<90xf32, #tpu.memory_space<smem>>
    %268 = vector.broadcast %267 : f32 to vector<8x256xf32>
    %269 = arith.mulf %268, %266 : vector<8x256xf32>
    %270 = arith.addf %229, %269 : vector<8x256xf32>
    %c15 = arith.constant 15 : index
    %271 = memref.load %arg1[%c15] : memref<90xf32, #tpu.memory_space<smem>>
    %272 = vector.broadcast %271 : f32 to vector<8x256xf32>
    %273 = arith.mulf %272, %266 : vector<8x256xf32>
    %274 = arith.addf %233, %273 : vector<8x256xf32>
    %c24 = arith.constant 24 : index
    %275 = memref.load %arg1[%c24] : memref<90xf32, #tpu.memory_space<smem>>
    %276 = vector.broadcast %275 : f32 to vector<8x256xf32>
    %277 = arith.mulf %276, %266 : vector<8x256xf32>
    %278 = arith.addf %237, %277 : vector<8x256xf32>
    %c33 = arith.constant 33 : index
    %279 = memref.load %arg1[%c33] : memref<90xf32, #tpu.memory_space<smem>>
    %280 = vector.broadcast %279 : f32 to vector<8x256xf32>
    %281 = arith.mulf %280, %266 : vector<8x256xf32>
    %282 = arith.addf %241, %281 : vector<8x256xf32>
    %c42 = arith.constant 42 : index
    %283 = memref.load %arg1[%c42] : memref<90xf32, #tpu.memory_space<smem>>
    %284 = vector.broadcast %283 : f32 to vector<8x256xf32>
    %285 = arith.mulf %284, %266 : vector<8x256xf32>
    %286 = arith.addf %245, %285 : vector<8x256xf32>
    %c51 = arith.constant 51 : index
    %287 = memref.load %arg1[%c51] : memref<90xf32, #tpu.memory_space<smem>>
    %288 = vector.broadcast %287 : f32 to vector<8x256xf32>
    %289 = arith.mulf %288, %266 : vector<8x256xf32>
    %290 = arith.addf %249, %289 : vector<8x256xf32>
    %c60 = arith.constant 60 : index
    %291 = memref.load %arg1[%c60] : memref<90xf32, #tpu.memory_space<smem>>
    %292 = vector.broadcast %291 : f32 to vector<8x256xf32>
    %293 = arith.mulf %292, %266 : vector<8x256xf32>
    %294 = arith.addf %253, %293 : vector<8x256xf32>
    %c69 = arith.constant 69 : index
    %295 = memref.load %arg1[%c69] : memref<90xf32, #tpu.memory_space<smem>>
    %296 = vector.broadcast %295 : f32 to vector<8x256xf32>
    %297 = arith.mulf %296, %266 : vector<8x256xf32>
    %298 = arith.addf %257, %297 : vector<8x256xf32>
    %c78 = arith.constant 78 : index
    %299 = memref.load %arg1[%c78] : memref<90xf32, #tpu.memory_space<smem>>
    %300 = vector.broadcast %299 : f32 to vector<8x256xf32>
    %301 = arith.mulf %300, %266 : vector<8x256xf32>
    %302 = arith.addf %261, %301 : vector<8x256xf32>
    %c87 = arith.constant 87 : index
    %303 = memref.load %arg1[%c87] : memref<90xf32, #tpu.memory_space<smem>>
    %304 = vector.broadcast %303 : f32 to vector<8x256xf32>
    %305 = arith.mulf %304, %266 : vector<8x256xf32>
    %306 = arith.addf %265, %305 : vector<8x256xf32>
    %c223_i32 = arith.constant 223 : i32
    %307 = tpu.dynamic_rotate %0 by %c223_i32 dim 1 : vector<8x256xf32>, i32 -> vector<8x256xf32>
    %c7_10 = arith.constant 7 : index
    %308 = memref.load %arg1[%c7_10] : memref<90xf32, #tpu.memory_space<smem>>
    %309 = vector.broadcast %308 : f32 to vector<8x256xf32>
    %310 = arith.mulf %309, %307 : vector<8x256xf32>
    %311 = arith.addf %270, %310 : vector<8x256xf32>
    %c16 = arith.constant 16 : index
    %312 = memref.load %arg1[%c16] : memref<90xf32, #tpu.memory_space<smem>>
    %313 = vector.broadcast %312 : f32 to vector<8x256xf32>
    %314 = arith.mulf %313, %307 : vector<8x256xf32>
    %315 = arith.addf %274, %314 : vector<8x256xf32>
    %c25 = arith.constant 25 : index
    %316 = memref.load %arg1[%c25] : memref<90xf32, #tpu.memory_space<smem>>
    %317 = vector.broadcast %316 : f32 to vector<8x256xf32>
    %318 = arith.mulf %317, %307 : vector<8x256xf32>
    %319 = arith.addf %278, %318 : vector<8x256xf32>
    %c34 = arith.constant 34 : index
    %320 = memref.load %arg1[%c34] : memref<90xf32, #tpu.memory_space<smem>>
    %321 = vector.broadcast %320 : f32 to vector<8x256xf32>
    %322 = arith.mulf %321, %307 : vector<8x256xf32>
    %323 = arith.addf %282, %322 : vector<8x256xf32>
    %c43 = arith.constant 43 : index
    %324 = memref.load %arg1[%c43] : memref<90xf32, #tpu.memory_space<smem>>
    %325 = vector.broadcast %324 : f32 to vector<8x256xf32>
    %326 = arith.mulf %325, %307 : vector<8x256xf32>
    %327 = arith.addf %286, %326 : vector<8x256xf32>
    %c52 = arith.constant 52 : index
    %328 = memref.load %arg1[%c52] : memref<90xf32, #tpu.memory_space<smem>>
    %329 = vector.broadcast %328 : f32 to vector<8x256xf32>
    %330 = arith.mulf %329, %307 : vector<8x256xf32>
    %331 = arith.addf %290, %330 : vector<8x256xf32>
    %c61 = arith.constant 61 : index
    %332 = memref.load %arg1[%c61] : memref<90xf32, #tpu.memory_space<smem>>
    %333 = vector.broadcast %332 : f32 to vector<8x256xf32>
    %334 = arith.mulf %333, %307 : vector<8x256xf32>
    %335 = arith.addf %294, %334 : vector<8x256xf32>
    %c70 = arith.constant 70 : index
    %336 = memref.load %arg1[%c70] : memref<90xf32, #tpu.memory_space<smem>>
    %337 = vector.broadcast %336 : f32 to vector<8x256xf32>
    %338 = arith.mulf %337, %307 : vector<8x256xf32>
    %339 = arith.addf %298, %338 : vector<8x256xf32>
    %c79 = arith.constant 79 : index
    %340 = memref.load %arg1[%c79] : memref<90xf32, #tpu.memory_space<smem>>
    %341 = vector.broadcast %340 : f32 to vector<8x256xf32>
    %342 = arith.mulf %341, %307 : vector<8x256xf32>
    %343 = arith.addf %302, %342 : vector<8x256xf32>
    %c88 = arith.constant 88 : index
    %344 = memref.load %arg1[%c88] : memref<90xf32, #tpu.memory_space<smem>>
    %345 = vector.broadcast %344 : f32 to vector<8x256xf32>
    %346 = arith.mulf %345, %307 : vector<8x256xf32>
    %347 = arith.addf %306, %346 : vector<8x256xf32>
    %c222_i32 = arith.constant 222 : i32
    %348 = tpu.dynamic_rotate %0 by %c222_i32 dim 1 : vector<8x256xf32>, i32 -> vector<8x256xf32>
    %c8_11 = arith.constant 8 : index
    %349 = memref.load %arg1[%c8_11] : memref<90xf32, #tpu.memory_space<smem>>
    %350 = vector.broadcast %349 : f32 to vector<8x256xf32>
    %351 = arith.mulf %350, %348 : vector<8x256xf32>
    %352 = arith.addf %311, %351 : vector<8x256xf32>
    %c17 = arith.constant 17 : index
    %353 = memref.load %arg1[%c17] : memref<90xf32, #tpu.memory_space<smem>>
    %354 = vector.broadcast %353 : f32 to vector<8x256xf32>
    %355 = arith.mulf %354, %348 : vector<8x256xf32>
    %356 = arith.addf %315, %355 : vector<8x256xf32>
    %c26 = arith.constant 26 : index
    %357 = memref.load %arg1[%c26] : memref<90xf32, #tpu.memory_space<smem>>
    %358 = vector.broadcast %357 : f32 to vector<8x256xf32>
    %359 = arith.mulf %358, %348 : vector<8x256xf32>
    %360 = arith.addf %319, %359 : vector<8x256xf32>
    %c35 = arith.constant 35 : index
    %361 = memref.load %arg1[%c35] : memref<90xf32, #tpu.memory_space<smem>>
    %362 = vector.broadcast %361 : f32 to vector<8x256xf32>
    %363 = arith.mulf %362, %348 : vector<8x256xf32>
    %364 = arith.addf %323, %363 : vector<8x256xf32>
    %c44 = arith.constant 44 : index
    %365 = memref.load %arg1[%c44] : memref<90xf32, #tpu.memory_space<smem>>
    %366 = vector.broadcast %365 : f32 to vector<8x256xf32>
    %367 = arith.mulf %366, %348 : vector<8x256xf32>
    %368 = arith.addf %327, %367 : vector<8x256xf32>
    %c53 = arith.constant 53 : index
    %369 = memref.load %arg1[%c53] : memref<90xf32, #tpu.memory_space<smem>>
    %370 = vector.broadcast %369 : f32 to vector<8x256xf32>
    %371 = arith.mulf %370, %348 : vector<8x256xf32>
    %372 = arith.addf %331, %371 : vector<8x256xf32>
    %c62 = arith.constant 62 : index
    %373 = memref.load %arg1[%c62] : memref<90xf32, #tpu.memory_space<smem>>
    %374 = vector.broadcast %373 : f32 to vector<8x256xf32>
    %375 = arith.mulf %374, %348 : vector<8x256xf32>
    %376 = arith.addf %335, %375 : vector<8x256xf32>
    %c71 = arith.constant 71 : index
    %377 = memref.load %arg1[%c71] : memref<90xf32, #tpu.memory_space<smem>>
    %378 = vector.broadcast %377 : f32 to vector<8x256xf32>
    %379 = arith.mulf %378, %348 : vector<8x256xf32>
    %380 = arith.addf %339, %379 : vector<8x256xf32>
    %c80 = arith.constant 80 : index
    %381 = memref.load %arg1[%c80] : memref<90xf32, #tpu.memory_space<smem>>
    %382 = vector.broadcast %381 : f32 to vector<8x256xf32>
    %383 = arith.mulf %382, %348 : vector<8x256xf32>
    %384 = arith.addf %343, %383 : vector<8x256xf32>
    %c89 = arith.constant 89 : index
    %385 = memref.load %arg1[%c89] : memref<90xf32, #tpu.memory_space<smem>>
    %386 = vector.broadcast %385 : f32 to vector<8x256xf32>
    %387 = arith.mulf %386, %348 : vector<8x256xf32>
    %388 = arith.addf %347, %387 : vector<8x256xf32>
    %c0_12 = arith.constant 0 : index
    %c0_13 = arith.constant 0 : index
    %c0_14 = arith.constant 0 : index
    %389 = vector.load %arg4[%c0_12, %c0_13, %c0_14] : memref<10x8x256xf32, #tpu.memory_space<vmem>>, vector<1x8x256xf32>
    %390 = vector.shape_cast %389 : vector<1x8x256xf32> to vector<8x256xf32>
    %391 = vector.shape_cast %352 : vector<8x256xf32> to vector<1x8x256xf32>
    tpu.vector_store %arg4[%c0_12, %c0_13, %c0_14], %391 {strides = array<i32>} : memref<10x8x256xf32, #tpu.memory_space<vmem>>, vector<1x8x256xf32>,
    %c1_15 = arith.constant 1 : index
    %c0_16 = arith.constant 0 : index
    %c0_17 = arith.constant 0 : index
    %392 = vector.load %arg4[%c1_15, %c0_16, %c0_17] : memref<10x8x256xf32, #tpu.memory_space<vmem>>, vector<1x8x256xf32>
    %393 = vector.shape_cast %392 : vector<1x8x256xf32> to vector<8x256xf32>
    %394 = vector.shape_cast %356 : vector<8x256xf32> to vector<1x8x256xf32>
    tpu.vector_store %arg4[%c1_15, %c0_16, %c0_17], %394 {strides = array<i32>} : memref<10x8x256xf32, #tpu.memory_space<vmem>>, vector<1x8x256xf32>,
    %c2_18 = arith.constant 2 : index
    %c0_19 = arith.constant 0 : index
    %c0_20 = arith.constant 0 : index
    %395 = vector.load %arg4[%c2_18, %c0_19, %c0_20] : memref<10x8x256xf32, #tpu.memory_space<vmem>>, vector<1x8x256xf32>
    %396 = vector.shape_cast %395 : vector<1x8x256xf32> to vector<8x256xf32>
    %397 = vector.shape_cast %360 : vector<8x256xf32> to vector<1x8x256xf32>
    tpu.vector_store %arg4[%c2_18, %c0_19, %c0_20], %397 {strides = array<i32>} : memref<10x8x256xf32, #tpu.memory_space<vmem>>, vector<1x8x256xf32>,
    %c3_21 = arith.constant 3 : index
    %c0_22 = arith.constant 0 : index
    %c0_23 = arith.constant 0 : index
    %398 = vector.load %arg4[%c3_21, %c0_22, %c0_23] : memref<10x8x256xf32, #tpu.memory_space<vmem>>, vector<1x8x256xf32>
    %399 = vector.shape_cast %398 : vector<1x8x256xf32> to vector<8x256xf32>
    %400 = vector.shape_cast %364 : vector<8x256xf32> to vector<1x8x256xf32>
    tpu.vector_store %arg4[%c3_21, %c0_22, %c0_23], %400 {strides = array<i32>} : memref<10x8x256xf32, #tpu.memory_space<vmem>>, vector<1x8x256xf32>,
    %c4_24 = arith.constant 4 : index
    %c0_25 = arith.constant 0 : index
    %c0_26 = arith.constant 0 : index
    %401 = vector.load %arg4[%c4_24, %c0_25, %c0_26] : memref<10x8x256xf32, #tpu.memory_space<vmem>>, vector<1x8x256xf32>
    %402 = vector.shape_cast %401 : vector<1x8x256xf32> to vector<8x256xf32>
    %403 = vector.shape_cast %368 : vector<8x256xf32> to vector<1x8x256xf32>
    tpu.vector_store %arg4[%c4_24, %c0_25, %c0_26], %403 {strides = array<i32>} : memref<10x8x256xf32, #tpu.memory_space<vmem>>, vector<1x8x256xf32>,
    %c5_27 = arith.constant 5 : index
    %c0_28 = arith.constant 0 : index
    %c0_29 = arith.constant 0 : index
    %404 = vector.load %arg4[%c5_27, %c0_28, %c0_29] : memref<10x8x256xf32, #tpu.memory_space<vmem>>, vector<1x8x256xf32>
    %405 = vector.shape_cast %404 : vector<1x8x256xf32> to vector<8x256xf32>
    %406 = vector.shape_cast %372 : vector<8x256xf32> to vector<1x8x256xf32>
    tpu.vector_store %arg4[%c5_27, %c0_28, %c0_29], %406 {strides = array<i32>} : memref<10x8x256xf32, #tpu.memory_space<vmem>>, vector<1x8x256xf32>,
    %c6_30 = arith.constant 6 : index
    %c0_31 = arith.constant 0 : index
    %c0_32 = arith.constant 0 : index
    %407 = vector.load %arg4[%c6_30, %c0_31, %c0_32] : memref<10x8x256xf32, #tpu.memory_space<vmem>>, vector<1x8x256xf32>
    %408 = vector.shape_cast %407 : vector<1x8x256xf32> to vector<8x256xf32>
    %409 = vector.shape_cast %376 : vector<8x256xf32> to vector<1x8x256xf32>
    tpu.vector_store %arg4[%c6_30, %c0_31, %c0_32], %409 {strides = array<i32>} : memref<10x8x256xf32, #tpu.memory_space<vmem>>, vector<1x8x256xf32>,
    %c7_33 = arith.constant 7 : index
    %c0_34 = arith.constant 0 : index
    %c0_35 = arith.constant 0 : index
    %410 = vector.load %arg4[%c7_33, %c0_34, %c0_35] : memref<10x8x256xf32, #tpu.memory_space<vmem>>, vector<1x8x256xf32>
    %411 = vector.shape_cast %410 : vector<1x8x256xf32> to vector<8x256xf32>
    %412 = vector.shape_cast %380 : vector<8x256xf32> to vector<1x8x256xf32>
    tpu.vector_store %arg4[%c7_33, %c0_34, %c0_35], %412 {strides = array<i32>} : memref<10x8x256xf32, #tpu.memory_space<vmem>>, vector<1x8x256xf32>,
    %c8_36 = arith.constant 8 : index
    %c0_37 = arith.constant 0 : index
    %c0_38 = arith.constant 0 : index
    %413 = vector.load %arg4[%c8_36, %c0_37, %c0_38] : memref<10x8x256xf32, #tpu.memory_space<vmem>>, vector<1x8x256xf32>
    %414 = vector.shape_cast %413 : vector<1x8x256xf32> to vector<8x256xf32>
    %415 = vector.shape_cast %384 : vector<8x256xf32> to vector<1x8x256xf32>
    tpu.vector_store %arg4[%c8_36, %c0_37, %c0_38], %415 {strides = array<i32>} : memref<10x8x256xf32, #tpu.memory_space<vmem>>, vector<1x8x256xf32>,
    %c9_39 = arith.constant 9 : index
    %c0_40 = arith.constant 0 : index
    %c0_41 = arith.constant 0 : index
    %416 = vector.load %arg4[%c9_39, %c0_40, %c0_41] : memref<10x8x256xf32, #tpu.memory_space<vmem>>, vector<1x8x256xf32>
    %417 = vector.shape_cast %416 : vector<1x8x256xf32> to vector<8x256xf32>
    %418 = vector.shape_cast %388 : vector<8x256xf32> to vector<1x8x256xf32>
    tpu.vector_store %arg4[%c9_39, %c0_40, %c0_41], %418 {strides = array<i32>} : memref<10x8x256xf32, #tpu.memory_space<vmem>>, vector<1x8x256xf32>,
    return
  }
  func.func @transform_0(%arg0: i32) -> i32 {
    %c0_i32 = arith.constant 0 : i32
    %c0_i32_0 = arith.constant 0 : i32
    return %c0_i32 : i32
  }
  func.func @transform_1(%arg0: i32) -> i32 {
    %c0_i32 = arith.constant 0 : i32
    %c0_i32_0 = arith.constant 0 : i32
    return %c0_i32 : i32
  }
  func.func @transform_2(%arg0: i32) -> (i32, i32) {
    %c0_i32 = arith.constant 0 : i32
    %c0_i32_0 = arith.constant 0 : i32
    return %arg0, %c0_i32 : i32, i32
  }
  func.func @transform_3(%arg0: i32) -> (i32, i32, i32) {
    %c0_i32 = arith.constant 0 : i32
    %c0_i32_0 = arith.constant 0 : i32
    %c0_i32_1 = arith.constant 0 : i32
    return %c0_i32, %arg0, %c0_i32_0 : i32, i32, i32
  }
}

</mosaic_0001>

<bundles_post_ra>
// kernel: tpu_custom_call.1
= control target key start
LH: loop header
LB: loop body
LE: loop exit
PB: predicated region body
PF: predicated region fallthrough
CT: control target
= control target key end

     0   :  { %s1808_s0 = inlined_call_operand.hbm [shape: f32[90], index: 0, kind: input, shape index: {}]   ;;  %s1809_s1 = inlined_call_operand.vmem [shape: f32[10], index: 1, kind: input, shape index: {}]   ;;  %s1810_s2 = inlined_call_operand.hbm [shape: f32[8,256], index: 2, kind: input, shape index: {}]   ;;  %s1811_s3 = inlined_call_operand.hbm [shape: f32[10,8,256], index: 3, kind: output, shape index: {}]  }
   0x1   :  { %1904 = sst [smem:[#allocation83_spill]] %s1811_s3 }
   0x2   :  { %8 = vsyncpa [#allocation5], 0 }
   0x3   :  { %9 = vsyncpa [#allocation6], 0 }
   0x4   :  { %10 = vsyncpa [#allocation3], 0 }
   0x5   :  { %11 = vsyncpa [#allocation4], 0  ;;  %s26_s14 = sshll.u32 %s1809_s1, 4  ;;  %s898_s15 = smov [#allocation2]   ;;  %s27_s14 = int_to_ptr.vmem [resolvable:$true] %s26_s14 }
   0x6   :  { %19 = dma.hbm_to_smem %s1808_s0, 16, %s898_s15, [#allocation5]  }
   0x7   :  { %s838_s18 = scalar_lea.vmem %s27_s14, 16  ;;  %p843_p1 = scmp.lt.s32.totalorder %s27_s14, %s27_s14 }
   0x8   :  { %p839_p0 = scmp.ne.s32.totalorder %s27_s14, %s838_s18  ;;  %p844_p2 = scmp.lt.s32.totalorder %s838_s18, %s838_s18 }
   0xa   :  { %p845_p3 = por %p844_p2, %p843_p1 }
   0xc   :  { %p846_p4 = pnand %p845_p3, %p839_p0 }
   0xe   :  { %849 = shalt.err (!%p846_p4)
}
   0xf   :  { %s899_s19 = smov [#allocation7]   ;;  %s900_s20 = smov [#allocation8]  }
  0x10   :  { %29 = dma.vmem_to_smem %s27_s14, 16, %s899_s19, [#allocation6]  }
  0x11   :  { %s36_s21 = sshll.u32 %s900_s20, 4  ;;  %s37_s21 = int_to_ptr.vmem [resolvable:$true] %s36_s21 }
  0x12   :  { %s858_s22 = scalar_lea.vmem %s37_s21, 256  ;;  %p863_p6 = scmp.lt.s32.totalorder %s37_s21, %s37_s21 }
  0x13   :  { %p859_p5 = scmp.ne.s32.totalorder %s37_s21, %s858_s22  ;;  %p864_p7 = scmp.lt.s32.totalorder %s858_s22, %s858_s22 }
  0x15   :  { %p865_p8 = por %p864_p7, %p863_p6 }
  0x17   :  { %p866_p9 = pnand %p865_p8, %p859_p5 }
  0x19   :  { %869 = shalt.err (!%p866_p9)
}
  0x1a   :  { %39 = dma.hbm_to_vmem [thread:$0]  %s1810_s2, 256, %s37_s21, [#allocation3]  }
  0x1b   :  { %890 = dma.done.wait [#allocation5], 16  }
  0x1c   :  { %891 = vsyncadd [#allocation5], 4294967280 }
  0x1d   :  { %892 = dma.done.wait [#allocation6], 16  }
  0x1e   :  { %893 = vsyncadd [#allocation6], 4294967280 }
  0x1f   :  { %894 = dma.done.wait [#allocation3], 256  }
  0x20   :  { %895 = vsyncadd [#allocation3], 4294967040 }
  0x21   :  { %49 = sfence }
  0x22   :  { %v941_v0 = vld [vmem:[#allocation8] sm:$0xff]  ;;  %s901_s23 = smov 126   ;;  %s902_s24 = smov 127   ;;  %v945_v1 = vld [vmem:[#allocation8 + $0x8] sm:$0xff]  ;;  %v136_v2 = vlaneseq }
  0x23   :  { %201 = vrot.lane.b32.xlu1 %v941_v0, %s901_s23  ;;  %132 = vrot.lane.b32.xlu0 %v941_v0, %s902_s24  ;;  %s903_s2 = smov 112   ;;  %s951_s25 = sld [smem:[#allocation2 + $0x2]] }
  0x24   :  { %s904_s26 = smov 111   ;;  %s955_s27 = sld [smem:[#allocation2 + $0xb]]  ;;  %v1108_v4 = vand.u32 127, %v136_v2 }
  0x25   :  { %s957_s28 = sld [smem:[#allocation2 + $0x14]]  ;;  %s905_s4 = smov 110  }
  0x26   :  { %s959_s29 = sld [smem:[#allocation2 + $0x1d]]  ;;  %s906_s9 = smov 96   ;;  %1964 = vst [vmem:[#allocation73_spill] sm:$0xff] %v1108_v4  ;;  %vm205_vm0 = vcmp.lt.s32.totalorder %v1108_v4, 126  ;;  %vm138_vm1 = vcmp.lt.s32.totalorder %v1108_v4, 127  ;;  %vm272_vm2 = vcmp.lt.s32.totalorder %v1108_v4, 112 }
  0x27   :  { %203 = vrot.lane.b32.xlu1 %v945_v1, %s901_s23  ;;  %134 = vrot.lane.b32.xlu0 %v945_v1, %s902_s24  ;;  %s961_s30 = sld [smem:[#allocation2 + $0x26]]  ;;  %s907_s14 = smov 95   ;;  %vm339_vm3 = vcmp.lt.s32.totalorder %v1108_v4, 111 }
  0x28   :  { %s965_s5 = sld [smem:[#allocation2 + $0x2f]]  ;;  %s908_s19 = smov 94  }
  0x29   :  { %1905 = sst [smem:[#allocation14_spill]] %s951_s25  ;;  %v209_v5 = vstv %s951_s25 }
  0x2a   :  { %1906 = sst [smem:[#allocation15_spill]] %s955_s27  ;;  %v215_v8 = vstv %s955_s27 }
  0x2b   :  { %270 = vrot.lane.b32.xlu1 %v945_v1, %s903_s2  ;;  %268 = vrot.lane.b32.xlu0 %v941_v0, %s903_s2  ;;  %1907 = sst [smem:[#allocation16_spill]] %s957_s28  ;;  %v221_v9 = vstv %s957_s28 }
  0x2c   :  { %1908 = sst [smem:[#allocation17_spill]] %s959_s29  ;;  %v227_v10 = vstv %s959_s29 }
  0x2d   :  { %1909 = sst [smem:[#allocation18_spill]] %s961_s30  ;;  %v233_v12 = vstv %s961_s30 }
  0x2e   :  { %1910 = sst [smem:[#allocation19_spill]] %s965_s5  ;;  %v239_v13 = vstv %s965_s5 }
  0x2f   :  { %337 = vrot.lane.b32.xlu1 %v945_v1, %s904_s26  ;;  %335 = vrot.lane.b32.xlu0 %v941_v0, %s904_s26  ;;  %s967_s6 = sld [smem:[#allocation2 + $0x38]] }
  0x30   :  { %s969_s7 = sld [smem:[#allocation2 + $0x41]] }
  0x31   :  { %s971_s8 = sld [smem:[#allocation2 + $0x4a]] }
  0x32   :  { %s975_s10 = sld [smem:[#allocation2 + $0x53]] }
  0x33   :  { %404 = vrot.lane.b32.xlu1 %v945_v1, %s905_s4  ;;  %402 = vrot.lane.b32.xlu0 %v941_v0, %s905_s4  ;;  %s977_s11 = sld [smem:[#allocation2]] }
  0x34   :  { %s979_s12 = sld [smem:[#allocation7]] }
  0x35   :  { %1911 = sst [smem:[#allocation20_spill]] %s967_s6  ;;  %v245_v24 = vstv %s967_s6 }
  0x36   :  { %1912 = sst [smem:[#allocation21_spill]] %s969_s7  ;;  %v251_v25 = vstv %s969_s7 }
  0x37   :  { %1913 = sst [smem:[#allocation22_spill]] %s971_s8  ;;  %471 = vrot.lane.b32.xlu1 %v945_v1, %s906_s9  ;;  %469 = vrot.lane.b32.xlu0 %v941_v0, %s906_s9  ;;  %v257_v26 = vstv %s971_s8 }
  0x38   :  { %1914 = sst [smem:[#allocation23_spill]] %s975_s10  ;;  %v263_v28 = vstv %s975_s10 }
  0x39   :  { %s981_s13 = sld [smem:[#allocation2 + $0x9]]  ;;  %v54_v3 = vstv %s977_s11 }
  0x3a   :  { %s985_s15 = sld [smem:[#allocation7 + $0x1]]  ;;  %v56_v14 = vmul.f32 %v54_v3, %v945_v1  ;;  %v55_v15 = vmul.f32 %v54_v3, %v941_v0  ;;  %v57_v16 = vstv %s979_s12 }
  0x3b   :  { %538 = vrot.lane.b32.xlu1 %v945_v1, %s907_s14  ;;  %536 = vrot.lane.b32.xlu0 %v941_v0, %s907_s14  ;;  %s987_s16 = sld [smem:[#allocation2 + $0x12]] }
  0x3c   :  { %s989_s17 = sld [smem:[#allocation7 + $0x2]]  ;;  %v1146_v29 = vadd.f32 %v57_v16, %v56_v14  ;;  %v1149_v31 = vadd.f32 %v57_v16, %v55_v15 }
  0x3d   :  { %s991_s18 = sld [smem:[#allocation2 + $0x1b]] }
  0x3e   :  { %s995_s20 = sld [smem:[#allocation7 + $0x3]] }
  0x3f   :  { %605 = vrot.lane.b32.xlu1 %v945_v1, %s908_s19  ;;  %603 = vrot.lane.b32.xlu0 %v941_v0, %s908_s19  ;;  %s997_s21 = sld [smem:[#allocation2 + $0x24]]  ;;  %v62_v6 = vstv %s981_s13 }
  0x40   :  { %s999_s22 = sld [smem:[#allocation7 + $0x4]]  ;;  %v64_v17 = vmul.f32 %v62_v6, %v945_v1  ;;  %v63_v19 = vmul.f32 %v62_v6, %v941_v0  ;;  %v65_v20 = vstv %s985_s15 }
  0x41   :  { %s1001_s0 = sld [smem:[#allocation2 + $0x2d]]  ;;  %v70_v7 = vstv %s987_s16 }
  0x42   :  { %s1003_s1 = sld [smem:[#allocation7 + $0x5]]  ;;  %v72_v18 = vmul.f32 %v70_v7, %v945_v1  ;;  %v73_v21 = vstv %s989_s17  ;;  %v71_v23 = vmul.f32 %v70_v7, %v941_v0  ;;  %v1153_v32 = vadd.f32 %v65_v20, %v64_v17 }
  0x43   :  { %s1005_s23 = sld [smem:[#allocation2 + $0x36]]  ;;  %v78_v11 = vstv %s991_s18  ;;  %v1158_v35 = vadd.f32 %v65_v20, %v63_v19 }
  0x44   :  { %s1007_s24 = sld [smem:[#allocation7 + $0x6]]  ;;  %v80_v22 = vmul.f32 %v78_v11, %v945_v1  ;;  %v81_v27 = vstv %s995_s20  ;;  %v1155_v33 = vadd.f32 %v73_v21, %v72_v18  ;;  %v1165_v38 = vadd.f32 %v73_v21, %v71_v23 }
  0x45   :  { %s1009_s2 = sld [smem:[#allocation2 + $0x3f]]  ;;  %v86_v30 = vstv %s997_s21  ;;  %v79_v39 = vmul.f32 %v78_v11, %v941_v0 }
  0x46   :  { %1915 = sst [smem:[#allocation24_spill]] %s999_s22  ;;  %v1162_v36 = vadd.f32 %v81_v27, %v80_v22  ;;  %v88_v40 = vmul.f32 %v86_v30, %v945_v1  ;;  %v87_v47 = vmul.f32 %v86_v30, %v941_v0 }
  0x47   :  { %s1011_s26 = sld [smem:[#allocation7 + $0x7]]  ;;  %v94_v34 = vstv %s1001_s0  ;;  %v1197_v59 = vadd.f32 %v81_v27, %v79_v39 }
  0x48   :  { %1916 = sst [smem:[#allocation25_spill]] %s1003_s1  ;;  %v96_v44 = vmul.f32 %v94_v34, %v945_v1  ;;  %v95_v50 = vmul.f32 %v94_v34, %v941_v0 }
  0x49   :  { %1917 = sst [smem:[#allocation26_spill]] %s1005_s23 }
  0x4a   :  { %1918 = sst [smem:[#allocation27_spill]] %s1007_s24 }
  0x4b   :  { %1919 = sst [smem:[#allocation28_spill]] %s1009_s2 }
  0x4c   :  { %s1013_s4 = sld [smem:[#allocation2 + $0x48]] }
  0x4d   :  { %1920 = sst [smem:[#allocation29_spill]] %s1011_s26 }
  0x4e   :  { %s1015_s9 = sld [smem:[#allocation7 + $0x8]] }
  0x4f   :  { %s1017_s14 = sld [smem:[#allocation2 + $0x51]] }
  0x50   :  { %s1019_s19 = sld [smem:[#allocation7 + $0x9]] }
  0x51   :  { %s1021_s3 = sld [smem:[#allocation2 + $0x1]] }
  0x52   :  { %1921 = sst [smem:[#allocation30_spill]] %s1013_s4 }
  0x53   :  { %s1023_s22 = sld [smem:[#allocation2 + $0xa]] }
  0x54   :  { %1922 = sst [smem:[#allocation31_spill]] %s1015_s9 }
  0x55   :  { %1923 = sst [smem:[#allocation32_spill]] %s1017_s14 }
  0x56   :  { %1924 = sst [smem:[#allocation33_spill]] %s1019_s19 }
  0x57   :  { %1925 = sst [smem:[#allocation34_spill]] %s1021_s3 }
  0x58   :  { %s1025_s1 = sld [smem:[#allocation2 + $0x13]] }
  0x59   :  { %1926 = sst [smem:[#allocation35_spill]] %s1023_s22 }
  0x5a   :  { %s1027_s23 = sld [smem:[#allocation2 + $0x1c]] }
  0x5b   :  { %s1029_s24 = sld [smem:[#allocation2 + $0x25]] }
  0x5c   :  { %s1031_s2 = sld [smem:[#allocation2 + $0x2e]] }
  0x5d   :  { %s1033_s26 = sld [smem:[#allocation2 + $0x37]] }
  0x5e   :  { %1927 = sst [smem:[#allocation36_spill]] %s1025_s1 }
  0x5f   :  { %s1035_s4 = sld [smem:[#allocation2 + $0x40]] }
  0x60   :  { %1928 = sst [smem:[#allocation37_spill]] %s1027_s23 }
  0x61   :  { %1929 = sst [smem:[#allocation38_spill]] %s1029_s24 }
  0x62   :  { %1930 = sst [smem:[#allocation39_spill]] %s1031_s2 }
  0x63   :  { %1931 = sst [smem:[#allocation40_spill]] %s1033_s26 }
  0x64   :  { %s1037_s9 = sld [smem:[#allocation2 + $0x49]] }
  0x65   :  { %1932 = sst [smem:[#allocation41_spill]] %s1035_s4 }
  0x66   :  { %s1039_s14 = sld [smem:[#allocation2 + $0x52]] }
  0x67   :  { %s1041_s19 = sld [smem:[#allocation2 + $0x3]] }
  0x68   :  { %s1043_s3 = sld [smem:[#allocation2 + $0xc]] }
  0x69   :  { %s1045_s22 = sld [smem:[#allocation2 + $0x15]] }
  0x6a   :  { %1933 = sst [smem:[#allocation42_spill]] %s1037_s9 }
  0x6b   :  { %s1047_s1 = sld [smem:[#allocation2 + $0x1e]] }
  0x6c   :  { %1934 = sst [smem:[#allocation43_spill]] %s1039_s14 }
  0x6d   :  { %1935 = sst [smem:[#allocation44_spill]] %s1041_s19 }
  0x6e   :  { %1936 = sst [smem:[#allocation45_spill]] %s1043_s3 }
  0x6f   :  { %1937 = sst [smem:[#allocation46_spill]] %s1045_s22 }
  0x70   :  { %s1049_s23 = sld [smem:[#allocation2 + $0x27]] }
  0x71   :  { %1938 = sst [smem:[#allocation47_spill]] %s1047_s1 }
  0x72   :  { %s1051_s24 = sld [smem:[#allocation2 + $0x30]] }
  0x73   :  { %s1053_s2 = sld [smem:[#allocation2 + $0x39]] }
  0x74   :  { %s1055_s26 = sld [smem:[#allocation2 + $0x42]] }
  0x75   :  { %s1057_s4 = sld [smem:[#allocation2 + $0x4b]] }
  0x76   :  { %1939 = sst [smem:[#allocation48_spill]] %s1049_s23 }
  0x77   :  { %s1059_s9 = sld [smem:[#allocation2 + $0x54]] }
  0x78   :  { %1940 = sst [smem:[#allocation49_spill]] %s1051_s24 }
  0x79   :  { %1941 = sst [smem:[#allocation50_spill]] %s1053_s2 }
  0x7a   :  { %1942 = sst [smem:[#allocation51_spill]] %s1055_s26 }
  0x7b   :  { %1943 = sst [smem:[#allocation52_spill]] %s1057_s4 }
  0x7c   :  { %s1061_s14 = sld [smem:[#allocation2 + $0x4]] }
  0x7d   :  { %1944 = sst [smem:[#allocation53_spill]] %s1059_s9 }
  0x7e   :  { %s1063_s19 = sld [smem:[#allocation2 + $0xd]] }
  0x7f   :  { %s1065_s3 = sld [smem:[#allocation2 + $0x16]] }
  0x80   :  { %s1067_s22 = sld [smem:[#allocation2 + $0x1f]] }
  0x81   :  { %s1069_s1 = sld [smem:[#allocation2 + $0x28]] }
  0x82   :  { %1945 = sst [smem:[#allocation54_spill]] %s1061_s14 }
  0x83   :  { %s1071_s23 = sld [smem:[#allocation2 + $0x31]] }
  0x84   :  { %1946 = sst [smem:[#allocation55_spill]] %s1063_s19 }
  0x85   :  { %1947 = sst [smem:[#allocation56_spill]] %s1065_s3 }
  0x86   :  { %1948 = sst [smem:[#allocation57_spill]] %s1067_s22 }
  0x87   :  { %1949 = sst [smem:[#allocation58_spill]] %s1069_s1 }
  0x88   :  { %s1073_s24 = sld [smem:[#allocation2 + $0x3a]] }
  0x89   :  { %1950 = sst [smem:[#allocation59_spill]] %s1071_s23 }
  0x8a   :  { %s1075_s2 = sld [smem:[#allocation2 + $0x43]] }
  0x8b   :  { %s1077_s4 = sld [smem:[#allocation2 + $0x4c]] }
  0x8c   :  { %s1079_s9 = sld [smem:[#allocation2 + $0x55]] }
  0x8d   :  { %s1081_s14 = sld [smem:[#allocation2 + $0x5]] }
  0x8e   :  { %1951 = sst [smem:[#allocation60_spill]] %s1073_s24 }
  0x8f   :  { %s1083_s19 = sld [smem:[#allocation2 + $0xe]] }
  0x90   :  { %1952 = sst [smem:[#allocation61_spill]] %s1075_s2 }
  0x91   :  { %1953 = sst [smem:[#allocation62_spill]] %s1077_s4 }
  0x92   :  { %1954 = sst [smem:[#allocation63_spill]] %s1079_s9 }
  0x93   :  { %1955 = sst [smem:[#allocation64_spill]] %s1081_s14 }
  0x94   :  { %s1085_s22 = sld [smem:[#allocation2 + $0x17]] }
  0x95   :  { %1956 = sst [smem:[#allocation65_spill]] %s1083_s19 }
  0x96   :  { %s1087_s1 = sld [smem:[#allocation2 + $0x20]] }
  0x97   :  { %s1089_s23 = sld [smem:[#allocation2 + $0x29]] }
  0x98   :  { %s1091_s2 = sld [smem:[#allocation2 + $0x32]] }
  0x99   :  { %s1093_s4 = sld [smem:[#allocation2 + $0x3b]] }
  0x9a   :  { %1957 = sst [smem:[#allocation66_spill]] %s1085_s22 }
  0x9b   :  { %s1095_s9 = sld [smem:[#allocation2 + $0x44]] }
  0x9c   :  { %1958 = sst [smem:[#allocation67_spill]] %s1087_s1 }
  0x9d   :  { %1959 = sst [smem:[#allocation68_spill]] %s1089_s23 }
  0x9e   :  { %1960 = sst [smem:[#allocation69_spill]] %s1091_s2 }
  0x9f   :  { %1961 = sst [smem:[#allocation70_spill]] %s1093_s4 }
  0xa0   :  { %s1097_s14 = sld [smem:[#allocation2 + $0x4d]] }
  0xa1   :  { %1962 = sst [smem:[#allocation71_spill]] %s1095_s9 }
  0xa2   :  { %s1099_s22 = sld [smem:[#allocation2 + $0x56]] }
  0xa3   :  { %s1101_s1 = sld [smem:[#allocation2 + $0x6]] }
  0xa4   :  { %s1103_s23 = sld [smem:[#allocation2 + $0xf]] }
  0xa5   :  { %s1106_s2 = sld [smem:[#allocation2 + $0x18]] }
  0xa6   :  { %s1113_s9 = sld [smem:[#allocation2 + $0x21]] }
  0xa7   :  { %s1125_s11 = sld [smem:[#allocation2 + $0x33]] }
  0xa8   :  { %s1131_s13 = sld [smem:[#allocation2 + $0x3c]] }
  0xa9   :  { %1963 = sst [smem:[#allocation72_spill]] %s1101_s1 }
  0xaa   :  { %s1119_s1 = sld [smem:[#allocation2 + $0x2a]] }
  0xab   :  { %s1137_s16 = sld [smem:[#allocation2 + $0x45]] }
  0xac   :  { %s1969_s12 = sld [smem:[#allocation26_spill]] }
  0xad   :  { %1966 = sst [smem:[#allocation75_spill]] %s1125_s11 }
  0xae   :  { %1967 = sst [smem:[#allocation76_spill]] %s1131_s13 }
  0xaf   :  { %s1143_s18 = sld [smem:[#allocation2 + $0x4e]] }
  0xb0   :  { %1965 = sst [smem:[#allocation74_spill]] %s1119_s1 }
  0xb1   :  { %1968 = sst [smem:[#allocation77_spill]] %s1137_s16 }
  0xb2   :  { %s1971_s5 = sld [smem:[#allocation24_spill]]  ;;  %v102_v37 = vstv %s1969_s12 }
  0xb3   :  { %s1972_s15 = sld [smem:[#allocation28_spill]]  ;;  %v104_v48 = vmul.f32 %v102_v37, %v945_v1  ;;  %v103_v51 = vmul.f32 %v102_v37, %v941_v0 }
  0xb4   :  { %s1973_s17 = sld [smem:[#allocation30_spill]] }
  0xb5   :  { %1970 = sst [smem:[#allocation26_spill]] %s1143_s18 }
  0xb6   :  { %s1151_s30 = sld [smem:[#allocation2 + $0x57]] }
  0xb7   :  { %s1975_s6 = sld [smem:[#allocation25_spill]] }
  0xb8   :  { %s1976_s8 = sld [smem:[#allocation32_spill]]  ;;  %v89_v41 = vstv %s1971_s5 }
  0xb9   :  { %s1160_s20 = sld [smem:[#allocation2 + $0x7]]  ;;  %v110_v42 = vstv %s1972_s15  ;;  %v1201_v60 = vadd.f32 %v89_v41, %v88_v40  ;;  %v1204_v62 = vadd.f32 %v89_v41, %v87_v47 }
  0xba   :  { %s1978_s10 = sld [smem:[#allocation27_spill]]  ;;  %v118_v43 = vstv %s1973_s17  ;;  %v112_v52 = vmul.f32 %v110_v42, %v945_v1  ;;  %v111_v54 = vmul.f32 %v110_v42, %v941_v0 }
  0xbb   :  { %s1168_s21 = sld [smem:[#allocation2 + $0x10]]  ;;  %v120_v53 = vmul.f32 %v118_v43, %v945_v1  ;;  %v119_v55 = vmul.f32 %v118_v43, %v941_v0 }
  0xbc   :  { %1974 = sst [smem:[#allocation24_spill]] %s1151_s30 }
  0xbd   :  { %s1174_s0 = sld [smem:[#allocation2 + $0x19]]  ;;  %v97_v45 = vstv %s1975_s6 }
  0xbe   :  { %s1981_s7 = sld [smem:[#allocation29_spill]]  ;;  %v126_v46 = vstv %s1976_s8  ;;  %v1209_v2 = vadd.f32 %v97_v45, %v96_v44  ;;  %v1213_v3 = vadd.f32 %v97_v45, %v95_v50 }
  0xbf   :  { %1977 = sst [smem:[#allocation28_spill]] %s1160_s20  ;;  %v128_v58 = vmul.f32 %v126_v46, %v945_v1  ;;  %v127_v63 = vmul.f32 %v126_v46, %v941_v0 }
  0xc0   :  { %s1982_s29 = sld [smem:[#allocation31_spill]]  ;;  %v105_v49 = vstv %s1978_s10 }
  0xc1   :  { %1979 = sst [smem:[#allocation30_spill]] %s1168_s21  ;;  %v1211_v1 = vadd.f32 %v105_v49, %v104_v48  ;;  %v1215_v6 = vadd.f32 %v105_v49, %v103_v51 }
  0xc2   :  { %s1180_s12 = sld [smem:[#allocation2 + $0x22]] }
  0xc3   :  { %1980 = sst [smem:[#allocation25_spill]] %s1174_s0 }
  0xc4   :  { %s1984_s28 = sld [smem:[#allocation33_spill]]  ;;  %v113_v56 = vstv %s1981_s7 }
  0xc5   :  { %s1186_s5 = sld [smem:[#allocation2 + $0x2b]]  ;;  %v1219_v7 = vadd.f32 %v113_v56, %v112_v52  ;;  %v1223_v11 = vadd.f32 %v113_v56, %v111_v54 }
  0xc6   :  { %s1192_s6 = sld [smem:[#allocation2 + $0x34]]  ;;  %v121_v57 = vstv %s1982_s29 }
  0xc7   :  { %s1199_s8 = sld [smem:[#allocation2 + $0x3d]]  ;;  %v1221_v0 = vadd.f32 %v121_v57, %v120_v53  ;;  %v1225_v14 = vadd.f32 %v121_v57, %v119_v55  ;;  %v133_v53 = vpop.permute.xlu0 %132 }
  0xc8   :  { %1983 = sst [smem:[#allocation32_spill]] %s1180_s12 }
  0xc9   :  { %s1988_s10 = sld [smem:[#allocation34_spill]] }
  0xca   :  { %v129_v61 = vstv %s1984_s28  ;;  %s1989_s15 = sld [smem:[#allocation35_spill]] }
  0xcb   :  { %1985 = sst [smem:[#allocation27_spill]] %s1186_s5  ;;  %v1229_v15 = vadd.f32 %v129_v61, %v128_v58  ;;  %v1239_v22 = vadd.f32 %v129_v61, %v127_v63  ;;  %v202_v63 = vpop.permute.xlu1 %201  ;;  %v135_v57 = vpop.permute.xlu0 %134 }
  0xcc   :  { %1986 = sst [smem:[#allocation29_spill]] %s1192_s6  ;;  %v139_v51 = vsel %vm138_vm1, %v133_v53, %v135_v57  ;;  %v140_v58 = vsel %vm138_vm1, %v135_v57, %v133_v53 }
  0xcd   :  { %1987 = sst [smem:[#allocation31_spill]] %s1199_s8 }
  0xce   :  { %s1990_s17 = sld [smem:[#allocation36_spill]] }
  0xcf   :  { %s1207_s27 = sld [smem:[#allocation2 + $0x46]]  ;;  %v142_v16 = vstv %s1988_s10  ;;  %v204_v54 = vpop.permute.xlu1 %203 }
  0xd0   :  { %s1992_s7 = sld [smem:[#allocation37_spill]]  ;;  %v148_v17 = vstv %s1989_s15  ;;  %v206_v52 = vsel %vm205_vm0, %v202_v63, %v204_v54  ;;  %v207_v55 = vsel %vm205_vm0, %v204_v54, %v202_v63  ;;  %v143_v42 = vmul.f32 %v142_v16, %v139_v51 }
  0xd1   :  { %s1993_s29 = sld [smem:[#allocation38_spill]]  ;;  %v1335_v61 = vmul.f32 %v209_v5, %v206_v52  ;;  %v211_v47 = vmul.f32 %v209_v5, %v207_v55  ;;  %v1341_v56 = vmul.f32 %v215_v8, %v206_v52  ;;  %v217_v54 = vmul.f32 %v215_v8, %v207_v55 }
  0xd2   :  { %s1994_s25 = sld [smem:[#allocation39_spill]]  ;;  %v1347_v63 = vmul.f32 %v221_v9, %v206_v52  ;;  %v223_v53 = vmul.f32 %v221_v9, %v207_v55  ;;  %v1353_v57 = vmul.f32 %v227_v10, %v206_v52  ;;  %v229_v5 = vmul.f32 %v227_v10, %v207_v55 }
  0xd3   :  { %s1217_s28 = sld [smem:[#allocation2 + $0x4f]]  ;;  %v1359_v46 = vmul.f32 %v233_v12, %v206_v52  ;;  %v235_v8 = vmul.f32 %v233_v12, %v207_v55  ;;  %v1365_v48 = vmul.f32 %v239_v13, %v206_v52  ;;  %v241_v9 = vmul.f32 %v239_v13, %v207_v55 }
  0xd4   :  { %s1996_s8 = sld [smem:[#allocation40_spill]]  ;;  %v154_v18 = vstv %s1990_s17  ;;  %v1371_v49 = vmul.f32 %v245_v24, %v206_v52  ;;  %v247_v10 = vmul.f32 %v245_v24, %v207_v55  ;;  %v1377_v50 = vmul.f32 %v251_v25, %v206_v52 }
  0xd5   :  { %1991 = sst [smem:[#allocation33_spill]] %s1207_s27  ;;  %v253_v45 = vmul.f32 %v251_v25, %v207_v55  ;;  %v1383_v12 = vmul.f32 %v257_v26, %v206_v52  ;;  %v259_v44 = vmul.f32 %v257_v26, %v207_v55  ;;  %v1389_v43 = vmul.f32 %v263_v28, %v206_v52 }
  0xd6   :  { %s1997_s6 = sld [smem:[#allocation41_spill]]  ;;  %v160_v19 = vstv %s1992_s7  ;;  %v265_v13 = vmul.f32 %v263_v28, %v207_v55  ;;  %v144_v24 = vmul.f32 %v142_v16, %v140_v58  ;;  %v149_v41 = vmul.f32 %v148_v17, %v139_v51 }
  0xd7   :  { %s1227_s12 = sld [smem:[#allocation2 + $0x58]]  ;;  %v166_v20 = vstv %s1993_s29  ;;  %v150_v25 = vmul.f32 %v148_v17, %v140_v58  ;;  %v155_v40 = vmul.f32 %v154_v18, %v139_v51  ;;  %v156_v26 = vmul.f32 %v154_v18, %v140_v58 }
  0xd8   :  { %s1234_s30 = sld [smem:[#allocation2 + $0x8]]  ;;  %v172_v21 = vstv %s1994_s25  ;;  %v161_v52 = vmul.f32 %v160_v19, %v139_v51  ;;  %v162_v28 = vmul.f32 %v160_v19, %v140_v58  ;;  %v145_v55 = vadd.f32 %v143_v42, %v1149_v31 }
  0xd9   :  { %1995 = sst [smem:[#allocation78_spill]] %s1217_s28  ;;  %v146_v16 = vadd.f32 %v144_v24, %v1146_v29  ;;  %v151_v39 = vadd.f32 %v149_v41, %v1158_v35  ;;  %v152_v17 = vadd.f32 %v150_v25, %v1153_v32  ;;  %v157_v37 = vadd.f32 %v155_v40, %v1165_v38  ;;  %v271_v40 = vpop.permute.xlu1 %270  ;;  %v269_v41 = vpop.permute.xlu0 %268 }
  0xda   :  { %v178_v23 = vstv %s1996_s8  ;;  %s1253_s1 = sld [smem:[#allocation2 + $0x23]]  ;;  %v158_v18 = vadd.f32 %v156_v26, %v1155_v33  ;;  %v163_v34 = vadd.f32 %v161_v52, %v1197_v59  ;;  %v164_v30 = vadd.f32 %v162_v28, %v1162_v36 }
  0xdb   :  { %s1259_s5 = sld [smem:[#allocation2 + $0x2c]]  ;;  %v167_v19 = vmul.f32 %v166_v20, %v139_v51  ;;  %v168_v31 = vmul.f32 %v166_v20, %v140_v58  ;;  %v173_v42 = vmul.f32 %v172_v21, %v139_v51  ;;  %v174_v29 = vmul.f32 %v172_v21, %v140_v58 }
  0xdc   :  { %v184_v27 = vstv %s1997_s6  ;;  %s1265_s20 = sld [smem:[#allocation2 + $0x35]]  ;;  %v179_v32 = vmul.f32 %v178_v23, %v139_v51  ;;  %v180_v33 = vmul.f32 %v178_v23, %v140_v58  ;;  %v231_v4 = vadd.f32 %v229_v5, %v164_v30 }
  0xdd   :  { %2000 = sst [smem:[#allocation79_spill]] %s1227_s12  ;;  %v185_v35 = vmul.f32 %v184_v27, %v139_v51  ;;  %v186_v36 = vmul.f32 %v184_v27, %v140_v58  ;;  %v169_v38 = vadd.f32 %v167_v19, %v1204_v62  ;;  %v170_v59 = vadd.f32 %v168_v31, %v1201_v60  ;;  %v338_v30 = vpop.permute.xlu1 %337 }
  0xde   :  { %2005 = sst [smem:[#allocation80_spill]] %s1234_s30  ;;  %v175_v20 = vadd.f32 %v173_v42, %v1213_v3  ;;  %v176_v21 = vadd.f32 %v174_v29, %v1209_v2  ;;  %v181_v24 = vadd.f32 %v179_v32, %v1215_v6  ;;  %v182_v25 = vadd.f32 %v180_v33, %v1211_v1 }
  0xdf   :  { %s1241_s12 = sld [smem:[#allocation2 + $0x11]]  ;;  %v187_v23 = vadd.f32 %v185_v35, %v1223_v11  ;;  %v188_v26 = vadd.f32 %v186_v36, %v1219_v7  ;;  %v213_v42 = vadd.f32 %v211_v47, %v146_v16  ;;  %v219_v2 = vadd.f32 %v217_v54, %v152_v17  ;;  %v2077_v54 = vld [vmem:[#allocation73_spill] sm:$0xff] }
  0xe0   :  { %s1247_s30 = sld [smem:[#allocation2 + $0x1a]]  ;;  %v225_v29 = vadd.f32 %v223_v53, %v158_v18  ;;  %v237_v32 = vadd.f32 %v235_v8, %v170_v59  ;;  %v243_v33 = vadd.f32 %v241_v9, %v176_v21  ;;  %v249_v35 = vadd.f32 %v247_v10, %v182_v25 }
  0xe1   :  { %2018 = sst [smem:[#allocation81_spill]] %s1259_s5  ;;  %v255_v36 = vadd.f32 %v253_v45, %v188_v26  ;;  %v218_v47 = vadd.f32 %v1341_v56, %v151_v39  ;;  %v248_v45 = vadd.f32 %v1371_v49, %v181_v24  ;;  %v254_v39 = vadd.f32 %v1377_v50, %v187_v23 }
  0xe2   :  { %s1271_s26 = sld [smem:[#allocation2 + $0x3e]]  ;;  %vm406_vm4 = vcmp.lt.s32.totalorder %v2077_v54, 110  ;;  %vm473_vm5 = vcmp.lt.s32.totalorder %v2077_v54, 96  ;;  %vm540_vm6 = vcmp.lt.s32.totalorder %v2077_v54, 95  ;;  %vm607_vm7 = vcmp.lt.s32.totalorder %v2077_v54, 94 }
  0xe3   :  { %s2027_s17 = sld [smem:[#allocation72_spill]] }
  0xe4   :  { %s1279_s25 = sld [smem:[#allocation2 + $0x47]] }
  0xe5   :  { %s2029_s7 = sld [smem:[#allocation74_spill]] }
  0xe6   :  { %s2031_s3 = sld [smem:[#allocation76_spill]] }
  0xe7   :  { %s2032_s15 = sld [smem:[#allocation77_spill]] }
  0xe8   :  { %2025 = sst [smem:[#allocation82_spill]] %s1271_s26 }
  0xe9   :  { %s1285_s10 = sld [smem:[#allocation2 + $0x50]] }
  0xea   :  { %2028 = sst [smem:[#allocation72_spill]] %s1279_s25 }
  0xeb   :  { %s2036_s8 = sld [smem:[#allocation28_spill]] }
  0xec   :  { %s1291_s27 = sld [smem:[#allocation2 + $0x59]] }
  0xed   :  { %s2038_s18 = sld [smem:[#allocation30_spill]] }
  0xee   :  { %s2040_s19 = sld [smem:[#allocation32_spill]] }
  0xef   :  { %2033 = sst [smem:[#allocation74_spill]] %s1285_s10 }
  0xf0   :  { %s2042_s21 = sld [smem:[#allocation29_spill]] }
  0xf1   :  { %s2043_s10 = sld [smem:[#allocation31_spill]] }
  0xf2   :  { %2037 = sst [smem:[#allocation76_spill]] %s1291_s27 }
  0xf3   :  { %s2045_s13 = sld [smem:[#allocation78_spill]] }
  0xf4   :  { %s2046_s11 = sld [smem:[#allocation79_spill]]  ;;  %v2193_v54 = vstv %s2040_s19 }
  0xf5   :  { %s2067_s16 = sld [smem:[#allocation42_spill]] }
  0xf6   :  { %s2068_s5 = sld [smem:[#allocation43_spill]] }
  0xf7   :  { %s2073_s29 = sld [smem:[#allocation44_spill]] }
  0xf8   :  { %s2074_s28 = sld [smem:[#allocation45_spill]] }
  0xf9   :  { %s2075_s6 = sld [smem:[#allocation46_spill]] }
  0xfa   :  { %s2076_s24 = sld [smem:[#allocation47_spill]] }
  0xfb   :  { %v2069_v52 = vstv %s2067_s16  ;;  %s2080_s0 = sld [smem:[#allocation48_spill]] }
  0xfc   :  { %v191_v27 = vmul.f32 %v2069_v52, %v139_v51  ;;  %v2070_v28 = vmov %v2069_v52  ;;  %v2071_v19 = vstv %s2068_s5  ;;  %s2083_s4 = sld [smem:[#allocation49_spill]] }
  0xfd   :  { %v192_v62 = vmul.f32 %v2070_v28, %v140_v58  ;;  %v197_v60 = vmul.f32 %v2071_v19, %v139_v51  ;;  %v2072_v31 = vmov %v2071_v19  ;;  %v2078_v49 = vstv %s2073_s29  ;;  %s2086_s26 = sld [smem:[#allocation50_spill]] }
  0xfe   :  { %v198_v3 = vmul.f32 %v2072_v31, %v140_v58  ;;  %v193_v6 = vadd.f32 %v191_v27, %v1225_v14  ;;  %v212_v58 = vadd.f32 %v1335_v61, %v145_v55  ;;  %v336_v14 = vpop.permute.xlu0 %335  ;;  %s2089_s27 = sld [smem:[#allocation51_spill]] }
  0xff   :  { %v194_v1 = vadd.f32 %v192_v62, %v1221_v0  ;;  %v199_v11 = vadd.f32 %v197_v60, %v1239_v22  ;;  %v224_v0 = vadd.f32 %v1347_v63, %v157_v37  ;;  %v236_v22 = vadd.f32 %v1359_v46, %v169_v38  ;;  %s2092_s25 = sld [smem:[#allocation52_spill]] }
 0x100   :  { %v200_v7 = vadd.f32 %v198_v3, %v1229_v15  ;;  %v230_v15 = vadd.f32 %v1353_v57, %v163_v34  ;;  %v260_v56 = vadd.f32 %v1383_v12, %v193_v6  ;;  %v273_v37 = vsel %vm272_vm2, %v269_v41, %v271_v40  ;;  %s2095_s16 = sld [smem:[#allocation53_spill]] }
 0x101   :  { %v261_v52 = vadd.f32 %v259_v44, %v194_v1  ;;  %v242_v44 = vadd.f32 %v1365_v48, %v175_v20  ;;  %v266_v61 = vadd.f32 %v1389_v43, %v199_v11  ;;  %v274_v34 = vsel %vm272_vm2, %v271_v40, %v269_v41  ;;  %s2098_s5 = sld [smem:[#allocation54_spill]] }
 0x102   :  { %v267_v51 = vadd.f32 %v265_v13, %v200_v7  ;;  %v1471_v46 = vsel %vm339_vm3, %v336_v14, %v338_v30  ;;  %v1475_v48 = vsel %vm339_vm3, %v338_v30, %v336_v14  ;;  %v277_v50 = vmul.f32 %v2078_v49, %v273_v37  ;;  %s2101_s29 = sld [smem:[#allocation55_spill]] }
 0x103   :  { %v2079_v63 = vmov %v2078_v49  ;;  %v2081_v43 = vstv %s2074_s28  ;;  %v2084_v9 = vstv %s2075_s6  ;;  %v2087_v55 = vstv %s2076_s24  ;;  %s2108_s28 = sld [smem:[#allocation56_spill]] }
 0x104   :  { %v278_v53 = vmul.f32 %v2079_v63, %v274_v34  ;;  %v283_v57 = vmul.f32 %v2081_v43, %v273_v37  ;;  %v2082_v5 = vmov %v2081_v43  ;;  %v289_v10 = vmul.f32 %v2084_v9, %v273_v37  ;;  %s2111_s6 = sld [smem:[#allocation57_spill]] }
 0x105   :  { %v284_v8 = vmul.f32 %v2082_v5, %v274_v34  ;;  %v2085_v12 = vmov %v2084_v9  ;;  %v295_v16 = vmul.f32 %v2087_v55, %v273_v37  ;;  %v2088_v17 = vmov %v2087_v55  ;;  %s2112_s24 = sld [smem:[#allocation58_spill]] }
 0x106   :  { %v290_v13 = vmul.f32 %v2085_v12, %v274_v34  ;;  %v296_v18 = vmul.f32 %v2088_v17, %v274_v34  ;;  %v279_v38 = vadd.f32 %v277_v50, %v212_v58  ;;  %v280_v59 = vadd.f32 %v278_v53, %v213_v42  ;;  %s2202_s19 = sld [smem:[#allocation80_spill]] }
 0x107   :  { %v285_v20 = vadd.f32 %v283_v57, %v218_v47  ;;  %v286_v21 = vadd.f32 %v284_v8, %v219_v2  ;;  %v291_v40 = vadd.f32 %v289_v10, %v224_v0  ;;  %v297_v24 = vadd.f32 %v295_v16, %v230_v15 }
 0x108   :  { %v292_v41 = vadd.f32 %v290_v13, %v225_v29  ;;  %v298_v25 = vadd.f32 %v296_v18, %v231_v4  ;;  %v2090_v23 = vstv %s2080_s0  ;;  %v2093_v62 = vstv %s2083_s4  ;;  %s2113_s0 = sld [smem:[#allocation59_spill]]  ;;  %v405_v18 = vpop.permute.xlu1 %404 }
 0x109   :  { %v301_v26 = vmul.f32 %v2090_v23, %v273_v37  ;;  %v2091_v27 = vmov %v2090_v23  ;;  %v307_v19 = vmul.f32 %v2093_v62, %v273_v37  ;;  %v2094_v60 = vmov %v2093_v62  ;;  %v403_v23 = vpop.permute.xlu0 %402  ;;  %s2116_s4 = sld [smem:[#allocation60_spill]] }
 0x10a   :  { %v302_v28 = vmul.f32 %v2091_v27, %v274_v34  ;;  %v308_v31 = vmul.f32 %v2094_v60, %v274_v34  ;;  %v2096_v3 = vstv %s2086_s26  ;;  %v2099_v29 = vstv %s2089_s27  ;;  %s2119_s26 = sld [smem:[#allocation61_spill]] }
 0x10b   :  { %v313_v42 = vmul.f32 %v2096_v3, %v273_v37  ;;  %v2097_v6 = vmov %v2096_v3  ;;  %v319_v4 = vmul.f32 %v2099_v29, %v273_v37  ;;  %v2100_v1 = vmov %v2099_v29  ;;  %s2122_s27 = sld [smem:[#allocation62_spill]] }
 0x10c   :  { %v314_v2 = vmul.f32 %v2097_v6, %v274_v34  ;;  %v320_v11 = vmul.f32 %v2100_v1, %v274_v34  ;;  %v303_v7 = vadd.f32 %v301_v26, %v236_v22  ;;  %v304_v58 = vadd.f32 %v302_v28, %v237_v32 }
 0x10d   :  { %v309_v47 = vadd.f32 %v307_v19, %v242_v44  ;;  %v310_v30 = vadd.f32 %v308_v31, %v243_v33  ;;  %v315_v14 = vadd.f32 %v313_v42, %v248_v45  ;;  %v321_v15 = vadd.f32 %v319_v4, %v254_v39 }
 0x10e   :  { %v316_v0 = vadd.f32 %v314_v2, %v249_v35  ;;  %v322_v49 = vadd.f32 %v320_v11, %v255_v36  ;;  %v2102_v50 = vstv %s2092_s25  ;;  %v2104_v57 = vstv %s2095_s16  ;;  %s2125_s25 = sld [smem:[#allocation63_spill]] }
 0x10f   :  { %v325_v63 = vmul.f32 %v2102_v50, %v273_v37  ;;  %v2103_v53 = vmov %v2102_v50  ;;  %v331_v5 = vmul.f32 %v2104_v57, %v273_v37  ;;  %v2105_v8 = vmov %v2104_v57  ;;  %s2134_s16 = sld [smem:[#allocation64_spill]] }
 0x110   :  { %v326_v43 = vmul.f32 %v2103_v53, %v274_v34  ;;  %v332_v9 = vmul.f32 %v2105_v8, %v274_v34  ;;  %v2106_v10 = vstv %s2098_s5  ;;  %v2109_v33 = vstv %s2101_s29  ;;  %s2135_s5 = sld [smem:[#allocation65_spill]] }
 0x111   :  { %v344_v12 = vmul.f32 %v2106_v10, %v1471_v46  ;;  %v2107_v22 = vmov %v2106_v10  ;;  %v350_v35 = vmul.f32 %v2109_v33, %v1471_v46  ;;  %v2110_v36 = vmov %v2109_v33  ;;  %s2136_s29 = sld [smem:[#allocation66_spill]] }
 0x112   :  { %v345_v32 = vmul.f32 %v2107_v22, %v1475_v48  ;;  %v351_v44 = vmul.f32 %v2110_v36, %v1475_v48  ;;  %v327_v45 = vadd.f32 %v325_v63, %v260_v56  ;;  %v328_v39 = vadd.f32 %v326_v43, %v261_v52  ;;  %v470_v22 = vpop.permute.xlu0 %469 }
 0x113   :  { %v333_v37 = vadd.f32 %v331_v5, %v266_v61  ;;  %v334_v34 = vadd.f32 %v332_v9, %v267_v51  ;;  %v346_v13 = vadd.f32 %v344_v12, %v279_v38  ;;  %v352_v16 = vadd.f32 %v350_v35, %v285_v20  ;;  %v472_v12 = vpop.permute.xlu1 %471 }
 0x114   :  { %v347_v55 = vadd.f32 %v345_v32, %v280_v59  ;;  %v353_v17 = vadd.f32 %v351_v44, %v286_v21  ;;  %v2114_v26 = vstv %s2108_s28  ;;  %v2117_v56 = vstv %s2111_s6  ;;  %s2137_s28 = sld [smem:[#allocation67_spill]] }
 0x115   :  { %v356_v27 = vmul.f32 %v2114_v26, %v1471_v46  ;;  %v2115_v28 = vmov %v2114_v26  ;;  %v362_v52 = vmul.f32 %v2117_v56, %v1471_v46  ;;  %v2118_v61 = vmov %v2117_v56  ;;  %s2140_s6 = sld [smem:[#allocation68_spill]] }
 0x116   :  { %v357_v62 = vmul.f32 %v2115_v28, %v1475_v48  ;;  %v363_v51 = vmul.f32 %v2118_v61, %v1475_v48  ;;  %v2120_v38 = vstv %s2112_s24  ;;  %v2123_v19 = vstv %s2113_s0  ;;  %s2143_s24 = sld [smem:[#allocation69_spill]] }
 0x117   :  { %v368_v59 = vmul.f32 %v2120_v38, %v1471_v46  ;;  %v2121_v20 = vmov %v2120_v38  ;;  %v374_v60 = vmul.f32 %v2123_v19, %v1471_v46  ;;  %v2124_v31 = vmov %v2123_v19  ;;  %s2146_s0 = sld [smem:[#allocation70_spill]] }
 0x118   :  { %v369_v21 = vmul.f32 %v2121_v20, %v1475_v48  ;;  %v375_v3 = vmul.f32 %v2124_v31, %v1475_v48  ;;  %v358_v42 = vadd.f32 %v356_v27, %v291_v40  ;;  %v359_v6 = vadd.f32 %v357_v62, %v292_v41 }
 0x119   :  { %v364_v2 = vadd.f32 %v362_v52, %v297_v24  ;;  %v365_v29 = vadd.f32 %v363_v51, %v298_v25  ;;  %v370_v4 = vadd.f32 %v368_v59, %v303_v7  ;;  %v376_v11 = vadd.f32 %v374_v60, %v309_v47 }
 0x11a   :  { %v371_v1 = vadd.f32 %v369_v21, %v304_v58  ;;  %v377_v50 = vadd.f32 %v375_v3, %v310_v30  ;;  %v2126_v63 = vstv %s2116_s4  ;;  %v2128_v5 = vstv %s2119_s26  ;;  %s2149_s4 = sld [smem:[#allocation71_spill]] }
 0x11b   :  { %v380_v53 = vmul.f32 %v2126_v63, %v1471_v46  ;;  %v2127_v43 = vmov %v2126_v63  ;;  %v386_v8 = vmul.f32 %v2128_v5, %v1471_v46  ;;  %v2129_v9 = vmov %v2128_v5 }
 0x11c   :  { %v381_v57 = vmul.f32 %v2127_v43, %v1475_v48  ;;  %v387_v10 = vmul.f32 %v2129_v9, %v1475_v48  ;;  %v2130_v40 = vstv %s2122_s27  ;;  %v2132_v7 = vstv %s2125_s25 }
 0x11d   :  { %v392_v41 = vmul.f32 %v2130_v40, %v1471_v46  ;;  %v2131_v24 = vmov %v2130_v40  ;;  %v398_v58 = vmul.f32 %v2132_v7, %v1471_v46  ;;  %v2133_v47 = vmov %v2132_v7 }
 0x11e   :  { %v393_v25 = vmul.f32 %v2131_v24, %v1475_v48  ;;  %v399_v30 = vmul.f32 %v2133_v47, %v1475_v48  ;;  %v382_v32 = vadd.f32 %v380_v53, %v315_v14  ;;  %v383_v33 = vadd.f32 %v381_v57, %v316_v0 }
 0x11f   :  { %v388_v35 = vadd.f32 %v386_v8, %v321_v15  ;;  %v389_v36 = vadd.f32 %v387_v10, %v322_v49  ;;  %v394_v44 = vadd.f32 %v392_v41, %v327_v45  ;;  %v400_v46 = vadd.f32 %v398_v58, %v333_v37 }
 0x120   :  { %v395_v26 = vadd.f32 %v393_v25, %v328_v39  ;;  %v401_v27 = vadd.f32 %v399_v30, %v334_v34  ;;  %v407_v48 = vsel %vm406_vm4, %v403_v23, %v405_v18  ;;  %v408_v28 = vsel %vm406_vm4, %v405_v18, %v403_v23 }
 0x121   :  { %v1585_v14 = vsel %vm473_vm5, %v470_v22, %v472_v12  ;;  %v1589_v0 = vsel %vm473_vm5, %v472_v12, %v470_v22  ;;  %v2138_v15 = vstv %s2134_s16  ;;  %v2141_v37 = vstv %s2135_s5 }
 0x122   :  { %v411_v49 = vmul.f32 %v2138_v15, %v407_v48  ;;  %v2139_v45 = vmov %v2138_v15  ;;  %v417_v34 = vmul.f32 %v2141_v37, %v407_v48  ;;  %v2142_v62 = vmov %v2141_v37 }
 0x123   :  { %v412_v39 = vmul.f32 %v2139_v45, %v408_v28  ;;  %v418_v56 = vmul.f32 %v2142_v62, %v408_v28  ;;  %v2144_v18 = vstv %s2136_s29  ;;  %v2147_v51 = vstv %s2137_s28 }
 0x124   :  { %v423_v23 = vmul.f32 %v2144_v18, %v407_v48  ;;  %v2145_v52 = vmov %v2144_v18  ;;  %v429_v38 = vmul.f32 %v2147_v51, %v407_v48  ;;  %v2148_v59 = vmov %v2147_v51 }
 0x125   :  { %v424_v61 = vmul.f32 %v2145_v52, %v408_v28  ;;  %v430_v20 = vmul.f32 %v2148_v59, %v408_v28  ;;  %v413_v21 = vadd.f32 %v411_v49, %v346_v13  ;;  %v414_v19 = vadd.f32 %v412_v39, %v347_v55 }
 0x126   :  { %v419_v60 = vadd.f32 %v417_v34, %v352_v16  ;;  %v420_v31 = vadd.f32 %v418_v56, %v353_v17  ;;  %v425_v3 = vadd.f32 %v423_v23, %v358_v42  ;;  %v431_v53 = vadd.f32 %v429_v38, %v364_v2 }
 0x127   :  { %v426_v63 = vadd.f32 %v424_v61, %v359_v6  ;;  %v432_v43 = vadd.f32 %v430_v20, %v365_v29  ;;  %v2150_v57 = vstv %s2140_s6  ;;  %v2152_v10 = vstv %s2143_s24  ;;  %v539_v20 = vpop.permute.xlu1 %538 }
 0x128   :  { %v435_v5 = vmul.f32 %v2150_v57, %v407_v48  ;;  %v2151_v8 = vmov %v2150_v57  ;;  %v441_v40 = vmul.f32 %v2152_v10, %v407_v48  ;;  %v2153_v41 = vmov %v2152_v10  ;;  %v537_v57 = vpop.permute.xlu0 %536 }
 0x129   :  { %v436_v9 = vmul.f32 %v2151_v8, %v408_v28  ;;  %v442_v24 = vmul.f32 %v2153_v41, %v408_v28  ;;  %v2154_v25 = vstv %s2146_s0  ;;  %v2156_v17 = vstv %s2149_s4 }
 0x12a   :  { %v447_v13 = vmul.f32 %v2154_v25, %v407_v48  ;;  %v2155_v55 = vmov %v2154_v25  ;;  %v453_v42 = vmul.f32 %v2156_v17, %v407_v48  ;;  %v2157_v6 = vmov %v2156_v17 }
 0x12b   :  { %v448_v16 = vmul.f32 %v2155_v55, %v408_v28  ;;  %v454_v2 = vmul.f32 %v2157_v6, %v408_v28  ;;  %v437_v29 = vadd.f32 %v435_v5, %v370_v4  ;;  %v438_v7 = vadd.f32 %v436_v9, %v371_v1 }
 0x12c   :  { %v443_v58 = vadd.f32 %v441_v40, %v376_v11  ;;  %v444_v47 = vadd.f32 %v442_v24, %v377_v50  ;;  %v449_v30 = vadd.f32 %v447_v13, %v382_v32  ;;  %v455_v22 = vadd.f32 %v453_v42, %v388_v35 }
 0x12d   :  { %v450_v12 = vadd.f32 %v448_v16, %v383_v33  ;;  %v456_v15 = vadd.f32 %v454_v2, %v389_v36  ;;  %v2158_v49 = vstv %s1097_s14  ;;  %v2160_v34 = vstv %s1099_s22  ;;  %s2166_s22 = sld [smem:[#allocation75_spill]] }
 0x12e   :  { %v459_v45 = vmul.f32 %v2158_v49, %v407_v48  ;;  %v2159_v39 = vmov %v2158_v49  ;;  %v465_v62 = vmul.f32 %v2160_v34, %v407_v48  ;;  %v2161_v56 = vmov %v2160_v34  ;;  %s2195_s14 = sld [smem:[#allocation33_spill]] }
 0x12f   :  { %v460_v37 = vmul.f32 %v2159_v39, %v408_v28  ;;  %v466_v18 = vmul.f32 %v2161_v56, %v408_v28  ;;  %v2162_v23 = vstv %s2027_s17  ;;  %v2164_v11 = vstv %s1103_s23  ;;  %s2173_s23 = sld [smem:[#allocation26_spill]] }
 0x130   :  { %v478_v52 = vmul.f32 %v2162_v23, %v1585_v14  ;;  %v2163_v4 = vmov %v2162_v23  ;;  %v484_v50 = vmul.f32 %v2164_v11, %v1585_v14  ;;  %v2165_v32 = vmov %v2164_v11 }
 0x131   :  { %v479_v1 = vmul.f32 %v2163_v4, %v1589_v0  ;;  %v485_v33 = vmul.f32 %v2165_v32, %v1589_v0  ;;  %v461_v35 = vadd.f32 %v459_v45, %v394_v44  ;;  %v462_v36 = vadd.f32 %v460_v37, %v395_v26  ;;  %v604_v4 = vpop.permute.xlu0 %603 }
 0x132   :  { %v467_v48 = vadd.f32 %v465_v62, %v400_v46  ;;  %v468_v28 = vadd.f32 %v466_v18, %v401_v27  ;;  %v480_v61 = vadd.f32 %v478_v52, %v413_v21  ;;  %v486_v38 = vadd.f32 %v484_v50, %v419_v60  ;;  %v606_v52 = vpop.permute.xlu1 %605 }
 0x133   :  { %v481_v51 = vadd.f32 %v479_v1, %v414_v19  ;;  %v487_v59 = vadd.f32 %v485_v33, %v420_v31  ;;  %v2167_v5 = vstv %s1106_s2  ;;  %v2169_v44 = vstv %s1113_s9  ;;  %s2176_s2 = sld [smem:[#allocation24_spill]] }
 0x134   :  { %v490_v8 = vmul.f32 %v2167_v5, %v1585_v14  ;;  %v2168_v9 = vmov %v2167_v5  ;;  %v496_v26 = vmul.f32 %v2169_v44, %v1585_v14  ;;  %v2170_v46 = vmov %v2169_v44  ;;  %s2188_s9 = sld [smem:[#allocation27_spill]] }
 0x135   :  { %v491_v10 = vmul.f32 %v2168_v9, %v1589_v0  ;;  %v497_v27 = vmul.f32 %v2170_v46, %v1589_v0  ;;  %v2171_v21 = vstv %s2029_s7  ;;  %v2174_v40 = vstv %s2166_s22 }
 0x136   :  { %v502_v19 = vmul.f32 %v2171_v21, %v1585_v14  ;;  %v2172_v60 = vmov %v2171_v21  ;;  %v508_v41 = vmul.f32 %v2174_v40, %v1585_v14  ;;  %v2175_v24 = vmov %v2174_v40 }
 0x137   :  { %v503_v31 = vmul.f32 %v2172_v60, %v1589_v0  ;;  %v509_v25 = vmul.f32 %v2175_v24, %v1589_v0  ;;  %v492_v13 = vadd.f32 %v490_v8, %v425_v3  ;;  %v493_v55 = vadd.f32 %v491_v10, %v426_v63 }
 0x138   :  { %v498_v16 = vadd.f32 %v496_v26, %v431_v53  ;;  %v499_v17 = vadd.f32 %v497_v27, %v432_v43  ;;  %v504_v42 = vadd.f32 %v502_v19, %v437_v29  ;;  %v510_v2 = vadd.f32 %v508_v41, %v443_v58 }
 0x139   :  { %v505_v6 = vadd.f32 %v503_v31, %v438_v7  ;;  %v511_v49 = vadd.f32 %v509_v25, %v444_v47  ;;  %v2177_v45 = vstv %s2031_s3  ;;  %v2179_v62 = vstv %s2032_s15  ;;  %s2185_s3 = sld [smem:[#allocation25_spill]] }
 0x13a   :  { %v514_v39 = vmul.f32 %v2177_v45, %v1585_v14  ;;  %v2178_v37 = vmov %v2177_v45  ;;  %v520_v56 = vmul.f32 %v2179_v62, %v1585_v14  ;;  %v2180_v18 = vmov %v2179_v62 }
 0x13b   :  { %v515_v34 = vmul.f32 %v2178_v37, %v1589_v0  ;;  %v521_v23 = vmul.f32 %v2180_v18, %v1589_v0  ;;  %v2181_v3 = vstv %s2173_s23  ;;  %v2183_v29 = vstv %s2176_s2 }
 0x13c   :  { %v526_v63 = vmul.f32 %v2181_v3, %v1585_v14  ;;  %v2182_v53 = vmov %v2181_v3  ;;  %v532_v7 = vmul.f32 %v2183_v29, %v1585_v14  ;;  %v2184_v58 = vmov %v2183_v29 }
 0x13d   :  { %v527_v43 = vmul.f32 %v2182_v53, %v1589_v0  ;;  %v533_v47 = vmul.f32 %v2184_v58, %v1589_v0  ;;  %v516_v1 = vadd.f32 %v514_v39, %v449_v30  ;;  %v517_v11 = vadd.f32 %v515_v34, %v450_v12 }
 0x13e   :  { %v522_v50 = vadd.f32 %v520_v56, %v455_v22  ;;  %v523_v32 = vadd.f32 %v521_v23, %v456_v15  ;;  %v528_v33 = vadd.f32 %v526_v63, %v461_v35  ;;  %v534_v14 = vadd.f32 %v532_v7, %v467_v48 }
 0x13f   :  { %v529_v5 = vadd.f32 %v527_v43, %v462_v36  ;;  %v535_v8 = vadd.f32 %v533_v47, %v468_v28  ;;  %v541_v0 = vsel %vm540_vm6, %v537_v57, %v539_v20  ;;  %v542_v9 = vsel %vm540_vm6, %v539_v20, %v537_v57 }
 0x140   :  { %v1699_v30 = vsel %vm607_vm7, %v604_v4, %v606_v52  ;;  %v1703_v12 = vsel %vm607_vm7, %v606_v52, %v604_v4  ;;  %v2186_v22 = vstv %s2036_s8  ;;  %v2189_v48 = vstv %s2038_s18  ;;  %s2211_s18 = sld [smem:[#allocation81_spill]] }
 0x141   :  { %v545_v15 = vmul.f32 %v2186_v22, %v541_v0  ;;  %v2187_v35 = vmov %v2186_v22  ;;  %v551_v28 = vmul.f32 %v2189_v48, %v541_v0  ;;  %v2190_v10 = vmov %v2189_v48 }
 0x142   :  { %v546_v36 = vmul.f32 %v2187_v35, %v542_v9  ;;  %v552_v44 = vmul.f32 %v2190_v10, %v542_v9  ;;  %v2191_v20 = vstv %s2185_s3  ;;  %v563_v27 = vmul.f32 %v2193_v54, %v541_v0 }
 0x143   :  { %v557_v57 = vmul.f32 %v2191_v20, %v541_v0  ;;  %v2192_v26 = vmov %v2191_v20  ;;  %v2194_v21 = vmov %v2193_v54  ;;  %v547_v60 = vadd.f32 %v545_v15, %v480_v61 }
 0x144   :  { %v558_v46 = vmul.f32 %v2192_v26, %v542_v9  ;;  %v564_v19 = vmul.f32 %v2194_v21, %v542_v9  ;;  %v548_v31 = vadd.f32 %v546_v36, %v481_v51  ;;  %v553_v40 = vadd.f32 %v551_v28, %v486_v38 }
 0x145   :  { %v554_v41 = vadd.f32 %v552_v44, %v487_v59  ;;  %v559_v24 = vadd.f32 %v557_v57, %v492_v13  ;;  %v565_v45 = vadd.f32 %v563_v27, %v498_v16  ;;  %v2196_v37 = vstv %s2188_s9 }
 0x146   :  { %v560_v25 = vadd.f32 %v558_v46, %v493_v55  ;;  %v566_v39 = vadd.f32 %v564_v19, %v499_v17  ;;  %v569_v34 = vmul.f32 %v2196_v37, %v541_v0  ;;  %v2197_v62 = vmov %v2196_v37 }
 0x147   :  { %v570_v56 = vmul.f32 %v2197_v62, %v542_v9  ;;  %v2198_v18 = vstv %s2042_s21  ;;  %v2200_v53 = vstv %s2043_s10  ;;  %v2203_v59 = vstv %s2195_s14 }
 0x148   :  { %v575_v23 = vmul.f32 %v2198_v18, %v541_v0  ;;  %v2199_v3 = vmov %v2198_v18  ;;  %v581_v61 = vmul.f32 %v2200_v53, %v541_v0  ;;  %v2201_v51 = vmov %v2200_v53 }
 0x149   :  { %v576_v63 = vmul.f32 %v2199_v3, %v542_v9  ;;  %v582_v38 = vmul.f32 %v2201_v51, %v542_v9  ;;  %v587_v13 = vmul.f32 %v2203_v59, %v541_v0  ;;  %v2204_v55 = vmov %v2203_v59 }
 0x14a   :  { %v588_v16 = vmul.f32 %v2204_v55, %v542_v9  ;;  %v571_v17 = vadd.f32 %v569_v34, %v504_v42  ;;  %v572_v43 = vadd.f32 %v570_v56, %v505_v6  ;;  %v577_v29 = vadd.f32 %v575_v23, %v510_v2 }
 0x14b   :  { %v578_v7 = vadd.f32 %v576_v63, %v511_v49  ;;  %v583_v58 = vadd.f32 %v581_v61, %v516_v1  ;;  %v584_v47 = vadd.f32 %v582_v38, %v517_v11  ;;  %v589_v52 = vadd.f32 %v587_v13, %v522_v50 }
 0x14c   :  { %v590_v4 = vadd.f32 %v588_v16, %v523_v32  ;;  %v2205_v22 = vstv %s2045_s13  ;;  %v2207_v48 = vstv %s2046_s11  ;;  %v2209_v42 = vstv %s2202_s19  ;;  %s2222_s11 = sld [smem:[#allocation82_spill]] }
 0x14d   :  { %v593_v15 = vmul.f32 %v2205_v22, %v541_v0  ;;  %v2206_v35 = vmov %v2205_v22  ;;  %v599_v28 = vmul.f32 %v2207_v48, %v541_v0  ;;  %v2208_v10 = vmov %v2207_v48  ;;  %s2225_s13 = sld [smem:[#allocation76_spill]] }
 0x14e   :  { %v594_v36 = vmul.f32 %v2206_v35, %v542_v9  ;;  %v600_v44 = vmul.f32 %v2208_v10, %v542_v9  ;;  %v612_v6 = vmul.f32 %v2209_v42, %v1699_v30  ;;  %v2210_v2 = vmov %v2209_v42 }
 0x14f   :  { %v613_v49 = vmul.f32 %v2210_v2, %v1703_v12  ;;  %v2212_v1 = vstv %s1241_s12  ;;  %v595_v0 = vadd.f32 %v593_v15, %v528_v33  ;;  %v601_v9 = vadd.f32 %v599_v28, %v534_v14 }
 0x150   :  { %v618_v11 = vmul.f32 %v2212_v1, %v1699_v30  ;;  %v2213_v50 = vmov %v2212_v1  ;;  %v596_v20 = vadd.f32 %v594_v36, %v529_v5  ;;  %v602_v57 = vadd.f32 %v600_v44, %v535_v8 }
 0x151   :  { %v619_v32 = vmul.f32 %v2213_v50, %v1703_v12  ;;  %v614_v26 = vadd.f32 %v612_v6, %v547_v60  ;;  %v615_v46 = vadd.f32 %v613_v49, %v548_v31  ;;  %v2214_v21 = vstv %s1247_s30  ;;  %s2223_s30 = sld [smem:[#allocation72_spill]] }
 0x152   :  { %v620_v54 = vadd.f32 %v618_v11, %v553_v40  ;;  %v624_v19 = vmul.f32 %v2214_v21, %v1699_v30  ;;  %v2215_v37 = vmov %v2214_v21  ;;  %v2216_v62 = vstv %s1253_s1  ;;  %s2224_s1 = sld [smem:[#allocation74_spill]] }
 0x153   :  { %v621_v27 = vadd.f32 %v619_v32, %v554_v41  ;;  %v625_v34 = vmul.f32 %v2215_v37, %v1703_v12  ;;  %v630_v56 = vmul.f32 %v2216_v62, %v1699_v30  ;;  %v2217_v18 = vmov %v2216_v62  ;;  %670 = vst [vmem:[#allocation9] sm:$0xff] %v614_v26  ;;  %671 = vst [vmem:[#allocation9 + $0x8] sm:$0xff] %v615_v46 }
 0x154   :  { %v631_v23 = vmul.f32 %v2217_v18, %v1703_v12  ;;  %v2218_v33 = vstv %s2211_s18  ;;  %v2220_v60 = vstv %s1265_s20  ;;  %673 = vst [vmem:[#allocation9 + $0x10] sm:$0xff] %v620_v54  ;;  %v626_v3 = vadd.f32 %v624_v19, %v559_v24  ;;  %s909_s20 = smov [#allocation9]  }
 0x155   :  { %v636_v5 = vmul.f32 %v2218_v33, %v1699_v30  ;;  %v2219_v14 = vmov %v2218_v33  ;;  %v642_v31 = vmul.f32 %v2220_v60, %v1699_v30  ;;  %v2221_v40 = vmov %v2220_v60  ;;  %674 = vst [vmem:[#allocation9 + $0x18] sm:$0xff] %v621_v27  ;;  %s704_s21 = sshll.u32 %s909_s20, 4  ;;  %s705_s21 = int_to_ptr.vmem [resolvable:$true] %s704_s21 }
 0x156   :  { %v637_v8 = vmul.f32 %v2219_v14, %v1703_v12  ;;  %v643_v41 = vmul.f32 %v2221_v40, %v1703_v12  ;;  %v627_v63 = vadd.f32 %v625_v34, %v560_v25  ;;  %v632_v53 = vadd.f32 %v630_v56, %v565_v45  ;;  %676 = vst [vmem:[#allocation9 + $0x20] sm:$0xff] %v626_v3  ;;  %s870_s12 = scalar_lea.vmem %s705_s21, 2560  ;;  %p875_p11 = scmp.lt.s32.totalorder %s705_s21, %s705_s21 }
 0x157   :  { %v633_v61 = vadd.f32 %v631_v23, %v566_v39  ;;  %v638_v51 = vadd.f32 %v636_v5, %v571_v17  ;;  %v644_v59 = vadd.f32 %v642_v31, %v577_v29  ;;  %v2226_v55 = vstv %s2222_s11  ;;  %p871_p10 = scmp.ne.s32.totalorder %s705_s21, %s870_s12  ;;  %p876_p12 = scmp.lt.s32.totalorder %s870_s12, %s870_s12 }
 0x158   :  { %v639_v38 = vadd.f32 %v637_v8, %v572_v43  ;;  %v645_v13 = vadd.f32 %v643_v41, %v578_v7  ;;  %v648_v16 = vmul.f32 %v2226_v55, %v1699_v30  ;;  %v2227_v22 = vmov %v2226_v55  ;;  %677 = vst [vmem:[#allocation9 + $0x28] sm:$0xff] %v627_v63  ;;  %679 = vst [vmem:[#allocation9 + $0x30] sm:$0xff] %v632_v53 }
 0x159   :  { %v649_v15 = vmul.f32 %v2227_v22, %v1703_v12  ;;  %v2228_v24 = vstv %s2223_s30  ;;  %680 = vst [vmem:[#allocation9 + $0x38] sm:$0xff] %v633_v61  ;;  %v2230_v17 = vstv %s2224_s1  ;;  %v2232_v35 = vstv %s2225_s13  ;;  %682 = vst [vmem:[#allocation9 + $0x40] sm:$0xff] %v638_v51  ;;  %p877_p13 = por %p876_p12, %p875_p11 }
 0x15a   :  { %v654_v25 = vmul.f32 %v2228_v24, %v1699_v30  ;;  %v2229_v45 = vmov %v2228_v24  ;;  %v660_v43 = vmul.f32 %v2230_v17, %v1699_v30  ;;  %v2231_v29 = vmov %v2230_v17  ;;  %683 = vst [vmem:[#allocation9 + $0x48] sm:$0xff] %v639_v38  ;;  %685 = vst [vmem:[#allocation9 + $0x50] sm:$0xff] %v644_v59 }
 0x15b   :  { %v655_v39 = vmul.f32 %v2229_v45, %v1703_v12  ;;  %v661_v7 = vmul.f32 %v2231_v29, %v1703_v12  ;;  %v666_v36 = vmul.f32 %v2232_v35, %v1699_v30  ;;  %v2233_v48 = vmov %v2232_v35  ;;  %686 = vst [vmem:[#allocation9 + $0x58] sm:$0xff] %v645_v13  ;;  %p878_p0 = pnand %p877_p13, %p871_p10 }
 0x15c   :  { %v667_v28 = vmul.f32 %v2233_v48, %v1703_v12  ;;  %v650_v10 = vadd.f32 %v648_v16, %v583_v58  ;;  %v651_v44 = vadd.f32 %v649_v15, %v584_v47  ;;  %v656_v42 = vadd.f32 %v654_v25, %v589_v52 }
 0x15d   :  { %v657_v6 = vadd.f32 %v655_v39, %v590_v4  ;;  %v662_v2 = vadd.f32 %v660_v43, %v595_v0  ;;  %v663_v49 = vadd.f32 %v661_v7, %v596_v20  ;;  %v668_v1 = vadd.f32 %v666_v36, %v601_v9 }
 0x15e   :  { %v669_v11 = vadd.f32 %v667_v28, %v602_v57  ;;  %688 = vst [vmem:[#allocation9 + $0x60] sm:$0xff] %v650_v10  ;;  %689 = vst [vmem:[#allocation9 + $0x68] sm:$0xff] %v651_v44 }
 0x15f   :  { %691 = vst [vmem:[#allocation9 + $0x70] sm:$0xff] %v656_v42  ;;  %692 = vst [vmem:[#allocation9 + $0x78] sm:$0xff] %v657_v6 }
 0x160   :  { %694 = vst [vmem:[#allocation9 + $0x80] sm:$0xff] %v662_v2  ;;  %695 = vst [vmem:[#allocation9 + $0x88] sm:$0xff] %v663_v49 }
 0x161   :  { %697 = vst [vmem:[#allocation9 + $0x90] sm:$0xff] %v668_v1  ;;  %698 = vst [vmem:[#allocation9 + $0x98] sm:$0xff] %v669_v11 }
 0x162   :  { %881 = shalt.err (!%p878_p0)
}
 0x163   :  { %s910_s8 = smov 256   ;;  %s911_s10 = smov 16  }
 0x164   :  { %s2234_s7 = sld [smem:[#allocation83_spill]] }
 0x16a   :  { %710 = dma.vmem_to_hbm [thread:$0]  %s705_s21, 2560, %s2234_s7, [#allocation4], %s910_s8, %s910_s8, %s911_s10  }
 0x16b   :  { %896 = dma.done.wait [#allocation4], 2560  }
 0x16c   :  { %897 = vsyncadd [#allocation4], 4294964736 }
 0x16d   :  { %714 = vsyncpa [#allocation3], 1 }
 0x16e   :  { %715 = vsyncpa [#allocation4], 1 }
 0x16f   :  { %716 = vsyncpa [#allocation5], 1 }
 0x170   :  { %717 = vsyncpa [#allocation6], 1 }

</bundles_post_ra>
